<compile_context>
chip_gen: v7x
topology: tpu7x:2x2x1
jax: 0.10.0
libtpu: 0.0.40
codegen_flags: <defaults>
</compile_context>

<pallas_src>
import functools

import jax
import jax.numpy as jnp
import numpy as np
from jax import lax
from jax.experimental import pallas as pl
from jax.experimental.pallas import tpu as pltpu


# ----------------------------------------------------------------------------
# Fused kernel: conv + relu + H-mean + LSTM + FC for one batch block.
# ----------------------------------------------------------------------------
def raag_kernel(x_ref, k9_ref, cb_ref, wih_ref, whh_ref, b_ref,
                wfc_ref, bfc_ref, o_ref, gx_scr, *, H, W, C, Hd, Bblk):
    # x_ref:  (Bblk, H, W) bf16     k9_ref: (9, C) bf16 (1/H folded in)
    # cb_ref: (1, C) f32 (1/H)      wih_ref:(C, 4H) bf16
    # whh_ref:(Hd, 4H) bf16         b_ref:  (1, 4H) f32
    # wfc_ref:(Hd, NC) bf16         bfc_ref:(1, NC) f32
    # o_ref:  (Bblk, NC) f32        gx_scr: (W, Bblk, 4H) f32 (time-major)
    f32, bf16 = jnp.float32, jnp.bfloat16

    # ---- 1) zero-pad the (Bblk, H, W) image block in VMEM ----
    x = x_ref[...]                                           # (Bblk, H, W)
    zr = jnp.zeros((Bblk, 1, W), x.dtype)
    zc = jnp.zeros((Bblk, H + 2, 1), x.dtype)
    xp = jnp.concatenate([zr, x, zr], axis=1)                # (Bblk, H+2, W)
    xp = jnp.concatenate([zc, xp, zc], axis=2)               # (Bblk, H+2, W+2)

    # ---- 2) 3x3 conv as im2col + one MXU matmul ----
    # Hoist the two lane-offset relayouts (dw = 1, 2) out of the 9-tap loop:
    # only 2 lane shifts total (XLU slot); the 9 taps are pure sublane slices.
    xs = [xp[:, :, dw:dw + W] for dw in range(3)]            # 3 x (Bblk, H+2, W)
    taps = [xs[dw][:, dh:dh + H, :][..., None]               # 9 x (Bblk, H, W, 1)
            for dh in range(3) for dw in range(3)]
    patches = jnp.concatenate(taps, axis=3).reshape(Bblk * H * W, 9)

    conv = jnp.dot(patches, k9_ref[...],                     # bf16 x bf16 -> f32
                   preferred_element_type=f32)               # (Bblk*H*W, C)
    conv = jnp.maximum(conv + cb_ref[...], 0.0)              # bias + ReLU
    # 1/H already folded into k9/cb, so a plain sum over H == AdaptiveAvgPool.
    feat = jnp.sum(conv.reshape(Bblk, H, W, C), axis=1)      # (Bblk, W, C)

    # ---- 3) hoisted LSTM input projection for all timesteps (one matmul) ----
    feat_t = jnp.transpose(feat, (1, 0, 2)).reshape(W * Bblk, C)   # time-major
    gx = jnp.dot(feat_t.astype(bf16), wih_ref[...],
                 preferred_element_type=f32)                  # (W*Bblk, 4H)
    gx_scr[...] = gx.reshape(W, Bblk, 4 * Hd) + b_ref[...]

    whh = whh_ref[...]                                        # (Hd, 4H) bf16, hoisted

    # ---- 4) the true recurrence: only h @ W_hh per step ----
    def step(t, carry):
        h, c = carry                                          # (Bblk, Hd) f32
        g = gx_scr[t] + jnp.dot(h.astype(bf16), whh,
                                preferred_element_type=f32)   # (Bblk, 4H)
        # 4*Hd == 128 lanes here: run the activations on the whole lane-dense
        # gate tile and slice afterwards.  (If 4*Hd ever exceeds 128 lanes,
        # reorder gates to [i|f|o|g] at wrapper time and split sigmoid/tanh.)
        sg = jax.nn.sigmoid(g)
        tg = jnp.tanh(g)
        i_g = sg[:, 0 * Hd:1 * Hd]
        f_g = sg[:, 1 * Hd:2 * Hd]
        g_g = tg[:, 2 * Hd:3 * Hd]
        o_g = sg[:, 3 * Hd:4 * Hd]
        c = f_g * c + i_g * g_g
        h = o_g * jnp.tanh(c)
        return (h, c)

    h0 = jnp.zeros((Bblk, Hd), f32)
    c0 = jnp.zeros((Bblk, Hd), f32)
    # Fully unroll only short sequences; partial unroll keeps vreg pressure sane.
    h_n, _ = lax.fori_loop(0, W, step, (h0, c0),
                           unroll=True if W <= 32 else 8)

    # ---- 5) fused final Linear on the last hidden state ----
    o_ref[...] = (jnp.dot(h_n.astype(bf16), wfc_ref[...],
                          preferred_element_type=f32)
                  + bfc_ref[...])                             # (Bblk, NC)


# ----------------------------------------------------------------------------
# Wrapper
# ----------------------------------------------------------------------------
def _const_spec(shape):
    """Full-array block with a constant index map (weights / biases).

    These operands never change block index, so request single buffering to
    avoid reserving a useless second VMEM buffer (scales with Hd^2, matters
    first on v7x's 64 MiB VMEM).  Falls back if this JAX version does not
    expose pipeline_mode / pl.Buffered.
    """
    idx = lambda i: (0,) * len(shape)
    try:
        return pl.BlockSpec(shape, idx, pipeline_mode=pl.Buffered(1))
    except Exception:
        return pl.BlockSpec(shape, idx)


def raag_recog_pallas(x_nchw, params):
    B, _, H, W = x_nchw.shape
    C = params["conv_w"].shape[0]             # 64 conv channels
    Hd = params["w_hh"].shape[1]              # hidden size
    NC = params["w_fc"].shape[0]              # num classes

    # Batch block: fill vreg sublanes (up to 8 samples / grid step) but keep
    # >= 2 grid steps when B >= 2 so the "parallel" batch axis can feed both
    # TensorCores on v7x (v5e/v6e: single TC, Bblk just maximizes matmul M).
    if B >= 16:
        b_blk = 8
    elif B >= 2:
        b_blk = max(1, B // 2)
    else:
        b_blk = 1
    nb = -(-B // b_blk)
    Bp = nb * b_blk

    # bf16 image in HBM halves the input DMA; accumulation stays f32.
    x = x_nchw[:, 0, :, :].astype(jnp.bfloat16)               # (B, H, W)
    if Bp != B:
        x = jnp.concatenate([x, jnp.zeros((Bp - B, H, W), x.dtype)], axis=0)

    inv_h = jnp.float32(1.0 / H)
    # conv weight (C,1,3,3) -> (9, C) with k9[dh*3+dw, c] = w[c,0,dh,dw];
    # fold the AdaptiveAvgPool 1/H into weight+bias (ReLU(z)/H == ReLU(z/H)).
    k9 = (params["conv_w"].reshape(C, 9).T * inv_h).astype(jnp.bfloat16)
    cb = (params["conv_b"] * inv_h).reshape(1, C).astype(jnp.float32)
    wih_t = params["w_ih"].T.astype(jnp.bfloat16)              # (C, 4Hd)
    whh_t = params["w_hh"].T.astype(jnp.bfloat16)              # (Hd, 4Hd)
    b_lstm = (params["b_ih"] + params["b_hh"]).reshape(1, 4 * Hd).astype(jnp.float32)
    wfc_t = params["w_fc"].T.astype(jnp.bfloat16)              # (Hd, NC)
    bfc = params["b_fc"].reshape(1, NC).astype(jnp.float32)

    out = pl.pallas_call(
        functools.partial(raag_kernel, H=H, W=W, C=C, Hd=Hd, Bblk=b_blk),
        out_shape=jax.ShapeDtypeStruct((nb, b_blk, NC), jnp.float32),
        grid=(nb,),
        in_specs=[
            pl.BlockSpec((b_blk, H, W), lambda i: (i, 0, 0)),  # image block
            _const_spec((9, C)),                               # conv weight
            _const_spec((1, C)),                               # conv bias
            _const_spec((C, 4 * Hd)),                          # W_ih^T
            _const_spec((Hd, 4 * Hd)),                         # W_hh^T
            _const_spec((1, 4 * Hd)),                          # b_ih + b_hh
            _const_spec((Hd, NC)),                             # W_fc^T
            _const_spec((1, NC)),                              # b_fc
        ],
        out_specs=pl.BlockSpec((None, b_blk, NC), lambda i: (i, 0, 0)),
        scratch_shapes=[pltpu.VMEM((W, b_blk, 4 * Hd), jnp.float32)],
        compiler_params=pltpu.CompilerParams(
            dimension_semantics=("parallel",),                 # batch-parallel
            vmem_limit_bytes=48 * 1024 * 1024),
    )(x, k9, cb, wih_t, whh_t, b_lstm, wfc_t, bfc)
    return out.reshape(Bp, NC)[:B]


# ----------------------------------------------------------------------------
# Pure-JAX reference (matches the PyTorch module semantics, all f32)
# ----------------------------------------------------------------------------
def raag_recog_ref(x_nchw, params):
    B, _, H, W = x_nchw.shape
    x = x_nchw[:, 0, :, :]
    cw = params["conv_w"]                                      # (64,1,3,3)
    xpad = jnp.pad(x, ((0, 0), (1, 1), (1, 1)))
    y = jnp.zeros((B, H, W, 64), jnp.float32)
    for dh in range(3):
        for dw in range(3):
            y = y + (xpad[:, dh:dh + H, dw:dw + W, None]
                     * cw[:, 0, dh, dw][None, None, None, :])
    y = jax.nn.relu(y + params["conv_b"])
    feat = jnp.mean(y, axis=1)                                 # (B, W, 64)

    Hd = params["w_hh"].shape[1]
    wih, whh = params["w_ih"], params["w_hh"]
    b = params["b_ih"] + params["b_hh"]

    def step(carry, xt):
        h, c = carry
        gates = xt @ wih.T + h @ whh.T + b
        i = jax.nn.sigmoid(gates[:, :Hd])
        f = jax.nn.sigmoid(gates[:, Hd:2 * Hd])
        g = jnp.tanh(gates[:, 2 * Hd:3 * Hd])
        o = jax.nn.sigmoid(gates[:, 3 * Hd:])
        c = f * c + i * g
        h = o * jnp.tanh(c)
        return (h, c), None

    h0 = jnp.zeros((B, Hd), jnp.float32)
    c0 = jnp.zeros((B, Hd), jnp.float32)
    (h_n, _), _ = lax.scan(step, (h0, c0), jnp.transpose(feat, (1, 0, 2)))
    return h_n @ params["w_fc"].T + params["b_fc"]


if __name__ == "__main__":
    B, H, W = 2, 16, 16
    hidden_size, num_classes = 32, 8

    key = jax.random.PRNGKey(0)
    ks = jax.random.split(key, 9)
    params = {
        "conv_w": 0.2 * jax.random.normal(ks[0], (64, 1, 3, 3), jnp.float32),
        "conv_b": 0.1 * jax.random.normal(ks[1], (64,), jnp.float32),
        "w_ih": 0.2 * jax.random.normal(ks[2], (4 * hidden_size, 64), jnp.float32),
        "w_hh": 0.2 * jax.random.normal(ks[3], (4 * hidden_size, hidden_size), jnp.float32),
        "b_ih": 0.1 * jax.random.normal(ks[4], (4 * hidden_size,), jnp.float32),
        "b_hh": 0.1 * jax.random.normal(ks[5], (4 * hidden_size,), jnp.float32),
        "w_fc": 0.2 * jax.random.normal(ks[6], (num_classes, hidden_size), jnp.float32),
        "b_fc": 0.1 * jax.random.normal(ks[7], (num_classes,), jnp.float32),
    }

    # Deterministic NCHW single-channel input (e.g. a spectrogram).
    x = jax.random.normal(ks[8], (B, 1, H, W), jnp.float32)

    out = jax.block_until_ready(raag_recog_pallas(x, params))
    ref = jax.block_until_ready(raag_recog_ref(x, params))

    assert out.shape == (B, num_classes)
    # Tolerance covers bf16 MXU operands vs the f32 VPU reference.
    np.testing.assert_allclose(np.asarray(out), np.asarray(ref),
                               rtol=2e-2, atol=2e-2)
    print("KERNEL_OK")
</pallas_src>

<mosaic_0001>
module attributes {stable_mosaic.version = 11 : i64} {
  func.func @raag_kernel(%arg0: i32, %arg1: memref<1x16x16xbf16, #tpu.memory_space<vmem>>, %arg2: memref<9x64xbf16, #tpu.memory_space<vmem>>, %arg3: memref<1x64xf32, #tpu.memory_space<vmem>>, %arg4: memref<64x128xbf16, #tpu.memory_space<vmem>>, %arg5: memref<32x128xbf16, #tpu.memory_space<vmem>>, %arg6: memref<1x128xf32, #tpu.memory_space<vmem>>, %arg7: memref<32x8xbf16, #tpu.memory_space<vmem>>, %arg8: memref<1x8xf32, #tpu.memory_space<vmem>>, %arg9: memref<1x1x8xf32, #tpu.memory_space<vmem>>, %arg10: memref<16x1x128xf32, #tpu.memory_space<vmem>>) attributes {dimension_semantics = [#tpu.dimension_semantics<parallel>], iteration_bounds = array<i64: 2>, scalar_prefetch = 0 : i64, scratch_operands = 1 : i64, tpu.core_type = #tpu.core_type<tc>, window_params = [{transform_indices = @transform_0, window_bounds = array<i64: 1, 16, 16>}, {pipeline_mode = #tpu.pipeline_mode<synchronous>, transform_indices = @transform_1, window_bounds = array<i64: 9, 64>}, {pipeline_mode = #tpu.pipeline_mode<synchronous>, transform_indices = @transform_2, window_bounds = array<i64: 1, 64>}, {pipeline_mode = #tpu.pipeline_mode<synchronous>, transform_indices = @transform_3, window_bounds = array<i64: 64, 128>}, {pipeline_mode = #tpu.pipeline_mode<synchronous>, transform_indices = @transform_4, window_bounds = array<i64: 32, 128>}, {pipeline_mode = #tpu.pipeline_mode<synchronous>, transform_indices = @transform_5, window_bounds = array<i64: 1, 128>}, {pipeline_mode = #tpu.pipeline_mode<synchronous>, transform_indices = @transform_6, window_bounds = array<i64: 32, 8>}, {pipeline_mode = #tpu.pipeline_mode<synchronous>, transform_indices = @transform_7, window_bounds = array<i64: 1, 8>}, {transform_indices = @transform_8, window_bounds = array<i64: 1, 1, 8>}]} {
    %c0 = arith.constant 0 : index
    %c0_0 = arith.constant 0 : index
    %c0_1 = arith.constant 0 : index
    %0 = vector.load %arg1[%c0, %c0_0, %c0_1] : memref<1x16x16xbf16, #tpu.memory_space<vmem>>, vector<1x16x16xbf16>
    %cst = arith.constant 0.000000e+00 : bf16
    %1 = vector.broadcast %cst : bf16 to vector<1x1x16xbf16>
    %cst_2 = arith.constant 0.000000e+00 : bf16
    %2 = vector.broadcast %cst_2 : bf16 to vector<1x18x1xbf16>
    %3 = tpu.concatenate %1, %0, %1 in 1 : vector<1x1x16xbf16>, vector<1x16x16xbf16>, vector<1x1x16xbf16> -> vector<1x18x16xbf16>
    %4 = tpu.concatenate %2, %3, %2 in 2 : vector<1x18x1xbf16>, vector<1x18x16xbf16>, vector<1x18x1xbf16> -> vector<1x18x18xbf16>
    %5 = vector.extract_strided_slice %4 {offsets = [0, 0, 0], sizes = [1, 18, 16], strides = [1, 1, 1]} : vector<1x18x18xbf16> to vector<1x18x16xbf16>
    %6 = vector.extract_strided_slice %4 {offsets = [0, 0, 1], sizes = [1, 18, 16], strides = [1, 1, 1]} : vector<1x18x18xbf16> to vector<1x18x16xbf16>
    %7 = vector.extract_strided_slice %4 {offsets = [0, 0, 2], sizes = [1, 18, 16], strides = [1, 1, 1]} : vector<1x18x18xbf16> to vector<1x18x16xbf16>
    %8 = vector.extract_strided_slice %5 {offsets = [0, 0, 0], sizes = [1, 16, 16], strides = [1, 1, 1]} : vector<1x18x16xbf16> to vector<1x16x16xbf16>
    %9 = vector.shape_cast %8 : vector<1x16x16xbf16> to vector<1x16x16x1xbf16>
    %10 = vector.extract_strided_slice %6 {offsets = [0, 0, 0], sizes = [1, 16, 16], strides = [1, 1, 1]} : vector<1x18x16xbf16> to vector<1x16x16xbf16>
    %11 = vector.shape_cast %10 : vector<1x16x16xbf16> to vector<1x16x16x1xbf16>
    %12 = vector.extract_strided_slice %7 {offsets = [0, 0, 0], sizes = [1, 16, 16], strides = [1, 1, 1]} : vector<1x18x16xbf16> to vector<1x16x16xbf16>
    %13 = vector.shape_cast %12 : vector<1x16x16xbf16> to vector<1x16x16x1xbf16>
    %14 = vector.extract_strided_slice %5 {offsets = [0, 1, 0], sizes = [1, 16, 16], strides = [1, 1, 1]} : vector<1x18x16xbf16> to vector<1x16x16xbf16>
    %15 = vector.shape_cast %14 : vector<1x16x16xbf16> to vector<1x16x16x1xbf16>
    %16 = vector.extract_strided_slice %6 {offsets = [0, 1, 0], sizes = [1, 16, 16], strides = [1, 1, 1]} : vector<1x18x16xbf16> to vector<1x16x16xbf16>
    %17 = vector.shape_cast %16 : vector<1x16x16xbf16> to vector<1x16x16x1xbf16>
    %18 = vector.extract_strided_slice %7 {offsets = [0, 1, 0], sizes = [1, 16, 16], strides = [1, 1, 1]} : vector<1x18x16xbf16> to vector<1x16x16xbf16>
    %19 = vector.shape_cast %18 : vector<1x16x16xbf16> to vector<1x16x16x1xbf16>
    %20 = vector.extract_strided_slice %5 {offsets = [0, 2, 0], sizes = [1, 16, 16], strides = [1, 1, 1]} : vector<1x18x16xbf16> to vector<1x16x16xbf16>
    %21 = vector.shape_cast %20 : vector<1x16x16xbf16> to vector<1x16x16x1xbf16>
    %22 = vector.extract_strided_slice %6 {offsets = [0, 2, 0], sizes = [1, 16, 16], strides = [1, 1, 1]} : vector<1x18x16xbf16> to vector<1x16x16xbf16>
    %23 = vector.shape_cast %22 : vector<1x16x16xbf16> to vector<1x16x16x1xbf16>
    %24 = vector.extract_strided_slice %7 {offsets = [0, 2, 0], sizes = [1, 16, 16], strides = [1, 1, 1]} : vector<1x18x16xbf16> to vector<1x16x16xbf16>
    %25 = vector.shape_cast %24 : vector<1x16x16xbf16> to vector<1x16x16x1xbf16>
    %26 = tpu.concatenate %9, %11, %13, %15, %17, %19, %21, %23, %25 in 3 : vector<1x16x16x1xbf16>, vector<1x16x16x1xbf16>, vector<1x16x16x1xbf16>, vector<1x16x16x1xbf16>, vector<1x16x16x1xbf16>, vector<1x16x16x1xbf16>, vector<1x16x16x1xbf16>, vector<1x16x16x1xbf16>, vector<1x16x16x1xbf16> -> vector<1x16x16x9xbf16>
    %27 = vector.shape_cast %26 : vector<1x16x16x9xbf16> to vector<256x9xbf16>
    %c0_3 = arith.constant 0 : index
    %c0_4 = arith.constant 0 : index
    %28 = vector.load %arg2[%c0_3, %c0_4] : memref<9x64xbf16, #tpu.memory_space<vmem>>, vector<9x64xbf16>
    %cst_5 = arith.constant dense<0.000000e+00> : vector<256x64xf32>
    %29 = tpu.matmul %27, %28, %cst_5 {dimension_numbers = #tpu.dot_dimension_numbers<[1], [0], [0], [1], [0, 0, 1, 1], [], []>} : vector<256x9xbf16>, vector<9x64xbf16>, vector<256x64xf32> -> vector<256x64xf32>
    %c0_6 = arith.constant 0 : index
    %c0_7 = arith.constant 0 : index
    %30 = vector.load %arg3[%c0_6, %c0_7] : memref<1x64xf32, #tpu.memory_space<vmem>>, vector<1x64xf32>
    %31 = vector.broadcast %30 : vector<1x64xf32> to vector<256x64xf32>
    %32 = arith.addf %29, %31 : vector<256x64xf32>
    %cst_8 = arith.constant 0.000000e+00 : f32
    %33 = vector.broadcast %cst_8 : f32 to vector<256x64xf32>
    %34 = arith.maximumf %32, %33 : vector<256x64xf32>
    %35 = vector.shape_cast %34 : vector<256x64xf32> to vector<1x16x16x64xf32>
    %cst_9 = arith.constant dense<0.000000e+00> : vector<1x16x64xf32>
    %36 = vector.multi_reduction <add>, %35, %cst_9 [1] : vector<1x16x16x64xf32> to vector<1x16x64xf32>
    %37 = tpu.transpose %36, [1, 0, 2] : vector<1x16x64xf32> -> vector<16x1x64xf32>
    %38 = vector.shape_cast %37 : vector<16x1x64xf32> to vector<16x64xf32>
    %39 = arith.truncf %38 : vector<16x64xf32> to vector<16x64xbf16>
    %c0_10 = arith.constant 0 : index
    %c0_11 = arith.constant 0 : index
    %40 = vector.load %arg4[%c0_10, %c0_11] : memref<64x128xbf16, #tpu.memory_space<vmem>>, vector<64x128xbf16>
    %cst_12 = arith.constant dense<0.000000e+00> : vector<16x128xf32>
    %41 = tpu.matmul %39, %40, %cst_12 {dimension_numbers = #tpu.dot_dimension_numbers<[1], [0], [0], [1], [0, 0, 1, 1], [], []>} : vector<16x64xbf16>, vector<64x128xbf16>, vector<16x128xf32> -> vector<16x128xf32>
    %42 = vector.shape_cast %41 : vector<16x128xf32> to vector<16x1x128xf32>
    %c0_13 = arith.constant 0 : index
    %c0_14 = arith.constant 0 : index
    %43 = vector.load %arg6[%c0_13, %c0_14] : memref<1x128xf32, #tpu.memory_space<vmem>>, vector<1x128xf32>
    %44 = vector.shape_cast %43 : vector<1x128xf32> to vector<1x1x128xf32>
    %45 = vector.broadcast %44 : vector<1x1x128xf32> to vector<16x1x128xf32>
    %46 = arith.addf %42, %45 : vector<16x1x128xf32>
    %c0_15 = arith.constant 0 : index
    %c0_16 = arith.constant 0 : index
    %c0_17 = arith.constant 0 : index
    %47 = vector.load %arg10[%c0_15, %c0_16, %c0_17] : memref<16x1x128xf32, #tpu.memory_space<vmem>>, vector<16x1x128xf32>
    tpu.vector_store %arg10[%c0_15, %c0_16, %c0_17], %46 {strides = array<i32>} : memref<16x1x128xf32, #tpu.memory_space<vmem>>, vector<16x1x128xf32>,
    %c0_18 = arith.constant 0 : index
    %c0_19 = arith.constant 0 : index
    %48 = vector.load %arg5[%c0_18, %c0_19] : memref<32x128xbf16, #tpu.memory_space<vmem>>, vector<32x128xbf16>
    %cst_20 = arith.constant 0.000000e+00 : f32
    %49 = vector.broadcast %cst_20 : f32 to vector<1x32xf32>
    %cst_21 = arith.constant 0.000000e+00 : f32
    %50 = vector.broadcast %cst_21 : f32 to vector<1x32xf32>
    %c0_i32 = arith.constant 0 : i32
    %51 = arith.index_cast %c0_i32 : i32 to index
    %c0_22 = arith.constant 0 : index
    %c0_23 = arith.constant 0 : index
    %52 = vector.load %arg10[%51, %c0_22, %c0_23] : memref<16x1x128xf32, #tpu.memory_space<vmem>>, vector<1x1x128xf32>
    %53 = vector.shape_cast %52 : vector<1x1x128xf32> to vector<1x128xf32>
    %54 = arith.truncf %49 : vector<1x32xf32> to vector<1x32xbf16>
    %cst_24 = arith.constant dense<0.000000e+00> : vector<1x128xf32>
    %55 = tpu.matmul %54, %48, %cst_24 {dimension_numbers = #tpu.dot_dimension_numbers<[1], [0], [0], [1], [0, 0, 1, 1], [], []>} : vector<1x32xbf16>, vector<32x128xbf16>, vector<1x128xf32> -> vector<1x128xf32>
    %56 = arith.addf %53, %55 : vector<1x128xf32>
    %57 = arith.negf %56 : vector<1x128xf32>
    %58 = math.exp %57 : vector<1x128xf32>
    %cst_25 = arith.constant 1.000000e+00 : f32
    %59 = vector.broadcast %cst_25 : f32 to vector<1x128xf32>
    %60 = arith.addf %59, %58 : vector<1x128xf32>
    %61 = arith.divf %59, %60 : vector<1x128xf32>
    %62 = math.tanh %56 : vector<1x128xf32>
    %63 = vector.extract_strided_slice %61 {offsets = [0, 0], sizes = [1, 32], strides = [1, 1]} : vector<1x128xf32> to vector<1x32xf32>
    %64 = vector.extract_strided_slice %61 {offsets = [0, 32], sizes = [1, 32], strides = [1, 1]} : vector<1x128xf32> to vector<1x32xf32>
    %65 = vector.extract_strided_slice %62 {offsets = [0, 64], sizes = [1, 32], strides = [1, 1]} : vector<1x128xf32> to vector<1x32xf32>
    %66 = vector.extract_strided_slice %61 {offsets = [0, 96], sizes = [1, 32], strides = [1, 1]} : vector<1x128xf32> to vector<1x32xf32>
    %67 = arith.mulf %64, %50 : vector<1x32xf32>
    %68 = arith.mulf %63, %65 : vector<1x32xf32>
    %69 = arith.addf %67, %68 : vector<1x32xf32>
    %70 = math.tanh %69 : vector<1x32xf32>
    %71 = arith.mulf %66, %70 : vector<1x32xf32>
    %c1_i32 = arith.constant 1 : i32
    %72 = arith.index_cast %c1_i32 : i32 to index
    %c0_26 = arith.constant 0 : index
    %c0_27 = arith.constant 0 : index
    %73 = vector.load %arg10[%72, %c0_26, %c0_27] : memref<16x1x128xf32, #tpu.memory_space<vmem>>, vector<1x1x128xf32>
    %74 = vector.shape_cast %73 : vector<1x1x128xf32> to vector<1x128xf32>
    %75 = arith.truncf %71 : vector<1x32xf32> to vector<1x32xbf16>
    %cst_28 = arith.constant dense<0.000000e+00> : vector<1x128xf32>
    %76 = tpu.matmul %75, %48, %cst_28 {dimension_numbers = #tpu.dot_dimension_numbers<[1], [0], [0], [1], [0, 0, 1, 1], [], []>} : vector<1x32xbf16>, vector<32x128xbf16>, vector<1x128xf32> -> vector<1x128xf32>
    %77 = arith.addf %74, %76 : vector<1x128xf32>
    %78 = arith.negf %77 : vector<1x128xf32>
    %79 = math.exp %78 : vector<1x128xf32>
    %cst_29 = arith.constant 1.000000e+00 : f32
    %80 = vector.broadcast %cst_29 : f32 to vector<1x128xf32>
    %81 = arith.addf %80, %79 : vector<1x128xf32>
    %82 = arith.divf %80, %81 : vector<1x128xf32>
    %83 = math.tanh %77 : vector<1x128xf32>
    %84 = vector.extract_strided_slice %82 {offsets = [0, 0], sizes = [1, 32], strides = [1, 1]} : vector<1x128xf32> to vector<1x32xf32>
    %85 = vector.extract_strided_slice %82 {offsets = [0, 32], sizes = [1, 32], strides = [1, 1]} : vector<1x128xf32> to vector<1x32xf32>
    %86 = vector.extract_strided_slice %83 {offsets = [0, 64], sizes = [1, 32], strides = [1, 1]} : vector<1x128xf32> to vector<1x32xf32>
    %87 = vector.extract_strided_slice %82 {offsets = [0, 96], sizes = [1, 32], strides = [1, 1]} : vector<1x128xf32> to vector<1x32xf32>
    %88 = arith.mulf %85, %69 : vector<1x32xf32>
    %89 = arith.mulf %84, %86 : vector<1x32xf32>
    %90 = arith.addf %88, %89 : vector<1x32xf32>
    %91 = math.tanh %90 : vector<1x32xf32>
    %92 = arith.mulf %87, %91 : vector<1x32xf32>
    %c2_i32 = arith.constant 2 : i32
    %93 = arith.index_cast %c2_i32 : i32 to index
    %c0_30 = arith.constant 0 : index
    %c0_31 = arith.constant 0 : index
    %94 = vector.load %arg10[%93, %c0_30, %c0_31] : memref<16x1x128xf32, #tpu.memory_space<vmem>>, vector<1x1x128xf32>
    %95 = vector.shape_cast %94 : vector<1x1x128xf32> to vector<1x128xf32>
    %96 = arith.truncf %92 : vector<1x32xf32> to vector<1x32xbf16>
    %cst_32 = arith.constant dense<0.000000e+00> : vector<1x128xf32>
    %97 = tpu.matmul %96, %48, %cst_32 {dimension_numbers = #tpu.dot_dimension_numbers<[1], [0], [0], [1], [0, 0, 1, 1], [], []>} : vector<1x32xbf16>, vector<32x128xbf16>, vector<1x128xf32> -> vector<1x128xf32>
    %98 = arith.addf %95, %97 : vector<1x128xf32>
    %99 = arith.negf %98 : vector<1x128xf32>
    %100 = math.exp %99 : vector<1x128xf32>
    %cst_33 = arith.constant 1.000000e+00 : f32
    %101 = vector.broadcast %cst_33 : f32 to vector<1x128xf32>
    %102 = arith.addf %101, %100 : vector<1x128xf32>
    %103 = arith.divf %101, %102 : vector<1x128xf32>
    %104 = math.tanh %98 : vector<1x128xf32>
    %105 = vector.extract_strided_slice %103 {offsets = [0, 0], sizes = [1, 32], strides = [1, 1]} : vector<1x128xf32> to vector<1x32xf32>
    %106 = vector.extract_strided_slice %103 {offsets = [0, 32], sizes = [1, 32], strides = [1, 1]} : vector<1x128xf32> to vector<1x32xf32>
    %107 = vector.extract_strided_slice %104 {offsets = [0, 64], sizes = [1, 32], strides = [1, 1]} : vector<1x128xf32> to vector<1x32xf32>
    %108 = vector.extract_strided_slice %103 {offsets = [0, 96], sizes = [1, 32], strides = [1, 1]} : vector<1x128xf32> to vector<1x32xf32>
    %109 = arith.mulf %106, %90 : vector<1x32xf32>
    %110 = arith.mulf %105, %107 : vector<1x32xf32>
    %111 = arith.addf %109, %110 : vector<1x32xf32>
    %112 = math.tanh %111 : vector<1x32xf32>
    %113 = arith.mulf %108, %112 : vector<1x32xf32>
    %c3_i32 = arith.constant 3 : i32
    %114 = arith.index_cast %c3_i32 : i32 to index
    %c0_34 = arith.constant 0 : index
    %c0_35 = arith.constant 0 : index
    %115 = vector.load %arg10[%114, %c0_34, %c0_35] : memref<16x1x128xf32, #tpu.memory_space<vmem>>, vector<1x1x128xf32>
    %116 = vector.shape_cast %115 : vector<1x1x128xf32> to vector<1x128xf32>
    %117 = arith.truncf %113 : vector<1x32xf32> to vector<1x32xbf16>
    %cst_36 = arith.constant dense<0.000000e+00> : vector<1x128xf32>
    %118 = tpu.matmul %117, %48, %cst_36 {dimension_numbers = #tpu.dot_dimension_numbers<[1], [0], [0], [1], [0, 0, 1, 1], [], []>} : vector<1x32xbf16>, vector<32x128xbf16>, vector<1x128xf32> -> vector<1x128xf32>
    %119 = arith.addf %116, %118 : vector<1x128xf32>
    %120 = arith.negf %119 : vector<1x128xf32>
    %121 = math.exp %120 : vector<1x128xf32>
    %cst_37 = arith.constant 1.000000e+00 : f32
    %122 = vector.broadcast %cst_37 : f32 to vector<1x128xf32>
    %123 = arith.addf %122, %121 : vector<1x128xf32>
    %124 = arith.divf %122, %123 : vector<1x128xf32>
    %125 = math.tanh %119 : vector<1x128xf32>
    %126 = vector.extract_strided_slice %124 {offsets = [0, 0], sizes = [1, 32], strides = [1, 1]} : vector<1x128xf32> to vector<1x32xf32>
    %127 = vector.extract_strided_slice %124 {offsets = [0, 32], sizes = [1, 32], strides = [1, 1]} : vector<1x128xf32> to vector<1x32xf32>
    %128 = vector.extract_strided_slice %125 {offsets = [0, 64], sizes = [1, 32], strides = [1, 1]} : vector<1x128xf32> to vector<1x32xf32>
    %129 = vector.extract_strided_slice %124 {offsets = [0, 96], sizes = [1, 32], strides = [1, 1]} : vector<1x128xf32> to vector<1x32xf32>
    %130 = arith.mulf %127, %111 : vector<1x32xf32>
    %131 = arith.mulf %126, %128 : vector<1x32xf32>
    %132 = arith.addf %130, %131 : vector<1x32xf32>
    %133 = math.tanh %132 : vector<1x32xf32>
    %134 = arith.mulf %129, %133 : vector<1x32xf32>
    %c4_i32 = arith.constant 4 : i32
    %135 = arith.index_cast %c4_i32 : i32 to index
    %c0_38 = arith.constant 0 : index
    %c0_39 = arith.constant 0 : index
    %136 = vector.load %arg10[%135, %c0_38, %c0_39] : memref<16x1x128xf32, #tpu.memory_space<vmem>>, vector<1x1x128xf32>
    %137 = vector.shape_cast %136 : vector<1x1x128xf32> to vector<1x128xf32>
    %138 = arith.truncf %134 : vector<1x32xf32> to vector<1x32xbf16>
    %cst_40 = arith.constant dense<0.000000e+00> : vector<1x128xf32>
    %139 = tpu.matmul %138, %48, %cst_40 {dimension_numbers = #tpu.dot_dimension_numbers<[1], [0], [0], [1], [0, 0, 1, 1], [], []>} : vector<1x32xbf16>, vector<32x128xbf16>, vector<1x128xf32> -> vector<1x128xf32>
    %140 = arith.addf %137, %139 : vector<1x128xf32>
    %141 = arith.negf %140 : vector<1x128xf32>
    %142 = math.exp %141 : vector<1x128xf32>
    %cst_41 = arith.constant 1.000000e+00 : f32
    %143 = vector.broadcast %cst_41 : f32 to vector<1x128xf32>
    %144 = arith.addf %143, %142 : vector<1x128xf32>
    %145 = arith.divf %143, %144 : vector<1x128xf32>
    %146 = math.tanh %140 : vector<1x128xf32>
    %147 = vector.extract_strided_slice %145 {offsets = [0, 0], sizes = [1, 32], strides = [1, 1]} : vector<1x128xf32> to vector<1x32xf32>
    %148 = vector.extract_strided_slice %145 {offsets = [0, 32], sizes = [1, 32], strides = [1, 1]} : vector<1x128xf32> to vector<1x32xf32>
    %149 = vector.extract_strided_slice %146 {offsets = [0, 64], sizes = [1, 32], strides = [1, 1]} : vector<1x128xf32> to vector<1x32xf32>
    %150 = vector.extract_strided_slice %145 {offsets = [0, 96], sizes = [1, 32], strides = [1, 1]} : vector<1x128xf32> to vector<1x32xf32>
    %151 = arith.mulf %148, %132 : vector<1x32xf32>
    %152 = arith.mulf %147, %149 : vector<1x32xf32>
    %153 = arith.addf %151, %152 : vector<1x32xf32>
    %154 = math.tanh %153 : vector<1x32xf32>
    %155 = arith.mulf %150, %154 : vector<1x32xf32>
    %c5_i32 = arith.constant 5 : i32
    %156 = arith.index_cast %c5_i32 : i32 to index
    %c0_42 = arith.constant 0 : index
    %c0_43 = arith.constant 0 : index
    %157 = vector.load %arg10[%156, %c0_42, %c0_43] : memref<16x1x128xf32, #tpu.memory_space<vmem>>, vector<1x1x128xf32>
    %158 = vector.shape_cast %157 : vector<1x1x128xf32> to vector<1x128xf32>
    %159 = arith.truncf %155 : vector<1x32xf32> to vector<1x32xbf16>
    %cst_44 = arith.constant dense<0.000000e+00> : vector<1x128xf32>
    %160 = tpu.matmul %159, %48, %cst_44 {dimension_numbers = #tpu.dot_dimension_numbers<[1], [0], [0], [1], [0, 0, 1, 1], [], []>} : vector<1x32xbf16>, vector<32x128xbf16>, vector<1x128xf32> -> vector<1x128xf32>
    %161 = arith.addf %158, %160 : vector<1x128xf32>
    %162 = arith.negf %161 : vector<1x128xf32>
    %163 = math.exp %162 : vector<1x128xf32>
    %cst_45 = arith.constant 1.000000e+00 : f32
    %164 = vector.broadcast %cst_45 : f32 to vector<1x128xf32>
    %165 = arith.addf %164, %163 : vector<1x128xf32>
    %166 = arith.divf %164, %165 : vector<1x128xf32>
    %167 = math.tanh %161 : vector<1x128xf32>
    %168 = vector.extract_strided_slice %166 {offsets = [0, 0], sizes = [1, 32], strides = [1, 1]} : vector<1x128xf32> to vector<1x32xf32>
    %169 = vector.extract_strided_slice %166 {offsets = [0, 32], sizes = [1, 32], strides = [1, 1]} : vector<1x128xf32> to vector<1x32xf32>
    %170 = vector.extract_strided_slice %167 {offsets = [0, 64], sizes = [1, 32], strides = [1, 1]} : vector<1x128xf32> to vector<1x32xf32>
    %171 = vector.extract_strided_slice %166 {offsets = [0, 96], sizes = [1, 32], strides = [1, 1]} : vector<1x128xf32> to vector<1x32xf32>
    %172 = arith.mulf %169, %153 : vector<1x32xf32>
    %173 = arith.mulf %168, %170 : vector<1x32xf32>
    %174 = arith.addf %172, %173 : vector<1x32xf32>
    %175 = math.tanh %174 : vector<1x32xf32>
    %176 = arith.mulf %171, %175 : vector<1x32xf32>
    %c6_i32 = arith.constant 6 : i32
    %177 = arith.index_cast %c6_i32 : i32 to index
    %c0_46 = arith.constant 0 : index
    %c0_47 = arith.constant 0 : index
    %178 = vector.load %arg10[%177, %c0_46, %c0_47] : memref<16x1x128xf32, #tpu.memory_space<vmem>>, vector<1x1x128xf32>
    %179 = vector.shape_cast %178 : vector<1x1x128xf32> to vector<1x128xf32>
    %180 = arith.truncf %176 : vector<1x32xf32> to vector<1x32xbf16>
    %cst_48 = arith.constant dense<0.000000e+00> : vector<1x128xf32>
    %181 = tpu.matmul %180, %48, %cst_48 {dimension_numbers = #tpu.dot_dimension_numbers<[1], [0], [0], [1], [0, 0, 1, 1], [], []>} : vector<1x32xbf16>, vector<32x128xbf16>, vector<1x128xf32> -> vector<1x128xf32>
    %182 = arith.addf %179, %181 : vector<1x128xf32>
    %183 = arith.negf %182 : vector<1x128xf32>
    %184 = math.exp %183 : vector<1x128xf32>
    %cst_49 = arith.constant 1.000000e+00 : f32
    %185 = vector.broadcast %cst_49 : f32 to vector<1x128xf32>
    %186 = arith.addf %185, %184 : vector<1x128xf32>
    %187 = arith.divf %185, %186 : vector<1x128xf32>
    %188 = math.tanh %182 : vector<1x128xf32>
    %189 = vector.extract_strided_slice %187 {offsets = [0, 0], sizes = [1, 32], strides = [1, 1]} : vector<1x128xf32> to vector<1x32xf32>
    %190 = vector.extract_strided_slice %187 {offsets = [0, 32], sizes = [1, 32], strides = [1, 1]} : vector<1x128xf32> to vector<1x32xf32>
    %191 = vector.extract_strided_slice %188 {offsets = [0, 64], sizes = [1, 32], strides = [1, 1]} : vector<1x128xf32> to vector<1x32xf32>
    %192 = vector.extract_strided_slice %187 {offsets = [0, 96], sizes = [1, 32], strides = [1, 1]} : vector<1x128xf32> to vector<1x32xf32>
    %193 = arith.mulf %190, %174 : vector<1x32xf32>
    %194 = arith.mulf %189, %191 : vector<1x32xf32>
    %195 = arith.addf %193, %194 : vector<1x32xf32>
    %196 = math.tanh %195 : vector<1x32xf32>
    %197 = arith.mulf %192, %196 : vector<1x32xf32>
    %c7_i32 = arith.constant 7 : i32
    %198 = arith.index_cast %c7_i32 : i32 to index
    %c0_50 = arith.constant 0 : index
    %c0_51 = arith.constant 0 : index
    %199 = vector.load %arg10[%198, %c0_50, %c0_51] : memref<16x1x128xf32, #tpu.memory_space<vmem>>, vector<1x1x128xf32>
    %200 = vector.shape_cast %199 : vector<1x1x128xf32> to vector<1x128xf32>
    %201 = arith.truncf %197 : vector<1x32xf32> to vector<1x32xbf16>
    %cst_52 = arith.constant dense<0.000000e+00> : vector<1x128xf32>
    %202 = tpu.matmul %201, %48, %cst_52 {dimension_numbers = #tpu.dot_dimension_numbers<[1], [0], [0], [1], [0, 0, 1, 1], [], []>} : vector<1x32xbf16>, vector<32x128xbf16>, vector<1x128xf32> -> vector<1x128xf32>
    %203 = arith.addf %200, %202 : vector<1x128xf32>
    %204 = arith.negf %203 : vector<1x128xf32>
    %205 = math.exp %204 : vector<1x128xf32>
    %cst_53 = arith.constant 1.000000e+00 : f32
    %206 = vector.broadcast %cst_53 : f32 to vector<1x128xf32>
    %207 = arith.addf %206, %205 : vector<1x128xf32>
    %208 = arith.divf %206, %207 : vector<1x128xf32>
    %209 = math.tanh %203 : vector<1x128xf32>
    %210 = vector.extract_strided_slice %208 {offsets = [0, 0], sizes = [1, 32], strides = [1, 1]} : vector<1x128xf32> to vector<1x32xf32>
    %211 = vector.extract_strided_slice %208 {offsets = [0, 32], sizes = [1, 32], strides = [1, 1]} : vector<1x128xf32> to vector<1x32xf32>
    %212 = vector.extract_strided_slice %209 {offsets = [0, 64], sizes = [1, 32], strides = [1, 1]} : vector<1x128xf32> to vector<1x32xf32>
    %213 = vector.extract_strided_slice %208 {offsets = [0, 96], sizes = [1, 32], strides = [1, 1]} : vector<1x128xf32> to vector<1x32xf32>
    %214 = arith.mulf %211, %195 : vector<1x32xf32>
    %215 = arith.mulf %210, %212 : vector<1x32xf32>
    %216 = arith.addf %214, %215 : vector<1x32xf32>
    %217 = math.tanh %216 : vector<1x32xf32>
    %218 = arith.mulf %213, %217 : vector<1x32xf32>
    %c8_i32 = arith.constant 8 : i32
    %219 = arith.index_cast %c8_i32 : i32 to index
    %c0_54 = arith.constant 0 : index
    %c0_55 = arith.constant 0 : index
    %220 = vector.load %arg10[%219, %c0_54, %c0_55] : memref<16x1x128xf32, #tpu.memory_space<vmem>>, vector<1x1x128xf32>
    %221 = vector.shape_cast %220 : vector<1x1x128xf32> to vector<1x128xf32>
    %222 = arith.truncf %218 : vector<1x32xf32> to vector<1x32xbf16>
    %cst_56 = arith.constant dense<0.000000e+00> : vector<1x128xf32>
    %223 = tpu.matmul %222, %48, %cst_56 {dimension_numbers = #tpu.dot_dimension_numbers<[1], [0], [0], [1], [0, 0, 1, 1], [], []>} : vector<1x32xbf16>, vector<32x128xbf16>, vector<1x128xf32> -> vector<1x128xf32>
    %224 = arith.addf %221, %223 : vector<1x128xf32>
    %225 = arith.negf %224 : vector<1x128xf32>
    %226 = math.exp %225 : vector<1x128xf32>
    %cst_57 = arith.constant 1.000000e+00 : f32
    %227 = vector.broadcast %cst_57 : f32 to vector<1x128xf32>
    %228 = arith.addf %227, %226 : vector<1x128xf32>
    %229 = arith.divf %227, %228 : vector<1x128xf32>
    %230 = math.tanh %224 : vector<1x128xf32>
    %231 = vector.extract_strided_slice %229 {offsets = [0, 0], sizes = [1, 32], strides = [1, 1]} : vector<1x128xf32> to vector<1x32xf32>
    %232 = vector.extract_strided_slice %229 {offsets = [0, 32], sizes = [1, 32], strides = [1, 1]} : vector<1x128xf32> to vector<1x32xf32>
    %233 = vector.extract_strided_slice %230 {offsets = [0, 64], sizes = [1, 32], strides = [1, 1]} : vector<1x128xf32> to vector<1x32xf32>
    %234 = vector.extract_strided_slice %229 {offsets = [0, 96], sizes = [1, 32], strides = [1, 1]} : vector<1x128xf32> to vector<1x32xf32>
    %235 = arith.mulf %232, %216 : vector<1x32xf32>
    %236 = arith.mulf %231, %233 : vector<1x32xf32>
    %237 = arith.addf %235, %236 : vector<1x32xf32>
    %238 = math.tanh %237 : vector<1x32xf32>
    %239 = arith.mulf %234, %238 : vector<1x32xf32>
    %c9_i32 = arith.constant 9 : i32
    %240 = arith.index_cast %c9_i32 : i32 to index
    %c0_58 = arith.constant 0 : index
    %c0_59 = arith.constant 0 : index
    %241 = vector.load %arg10[%240, %c0_58, %c0_59] : memref<16x1x128xf32, #tpu.memory_space<vmem>>, vector<1x1x128xf32>
    %242 = vector.shape_cast %241 : vector<1x1x128xf32> to vector<1x128xf32>
    %243 = arith.truncf %239 : vector<1x32xf32> to vector<1x32xbf16>
    %cst_60 = arith.constant dense<0.000000e+00> : vector<1x128xf32>
    %244 = tpu.matmul %243, %48, %cst_60 {dimension_numbers = #tpu.dot_dimension_numbers<[1], [0], [0], [1], [0, 0, 1, 1], [], []>} : vector<1x32xbf16>, vector<32x128xbf16>, vector<1x128xf32> -> vector<1x128xf32>
    %245 = arith.addf %242, %244 : vector<1x128xf32>
    %246 = arith.negf %245 : vector<1x128xf32>
    %247 = math.exp %246 : vector<1x128xf32>
    %cst_61 = arith.constant 1.000000e+00 : f32
    %248 = vector.broadcast %cst_61 : f32 to vector<1x128xf32>
    %249 = arith.addf %248, %247 : vector<1x128xf32>
    %250 = arith.divf %248, %249 : vector<1x128xf32>
    %251 = math.tanh %245 : vector<1x128xf32>
    %252 = vector.extract_strided_slice %250 {offsets = [0, 0], sizes = [1, 32], strides = [1, 1]} : vector<1x128xf32> to vector<1x32xf32>
    %253 = vector.extract_strided_slice %250 {offsets = [0, 32], sizes = [1, 32], strides = [1, 1]} : vector<1x128xf32> to vector<1x32xf32>
    %254 = vector.extract_strided_slice %251 {offsets = [0, 64], sizes = [1, 32], strides = [1, 1]} : vector<1x128xf32> to vector<1x32xf32>
    %255 = vector.extract_strided_slice %250 {offsets = [0, 96], sizes = [1, 32], strides = [1, 1]} : vector<1x128xf32> to vector<1x32xf32>
    %256 = arith.mulf %253, %237 : vector<1x32xf32>
    %257 = arith.mulf %252, %254 : vector<1x32xf32>
    %258 = arith.addf %256, %257 : vector<1x32xf32>
    %259 = math.tanh %258 : vector<1x32xf32>
    %260 = arith.mulf %255, %259 : vector<1x32xf32>
    %c10_i32 = arith.constant 10 : i32
    %261 = arith.index_cast %c10_i32 : i32 to index
    %c0_62 = arith.constant 0 : index
    %c0_63 = arith.constant 0 : index
    %262 = vector.load %arg10[%261, %c0_62, %c0_63] : memref<16x1x128xf32, #tpu.memory_space<vmem>>, vector<1x1x128xf32>
    %263 = vector.shape_cast %262 : vector<1x1x128xf32> to vector<1x128xf32>
    %264 = arith.truncf %260 : vector<1x32xf32> to vector<1x32xbf16>
    %cst_64 = arith.constant dense<0.000000e+00> : vector<1x128xf32>
    %265 = tpu.matmul %264, %48, %cst_64 {dimension_numbers = #tpu.dot_dimension_numbers<[1], [0], [0], [1], [0, 0, 1, 1], [], []>} : vector<1x32xbf16>, vector<32x128xbf16>, vector<1x128xf32> -> vector<1x128xf32>
    %266 = arith.addf %263, %265 : vector<1x128xf32>
    %267 = arith.negf %266 : vector<1x128xf32>
    %268 = math.exp %267 : vector<1x128xf32>
    %cst_65 = arith.constant 1.000000e+00 : f32
    %269 = vector.broadcast %cst_65 : f32 to vector<1x128xf32>
    %270 = arith.addf %269, %268 : vector<1x128xf32>
    %271 = arith.divf %269, %270 : vector<1x128xf32>
    %272 = math.tanh %266 : vector<1x128xf32>
    %273 = vector.extract_strided_slice %271 {offsets = [0, 0], sizes = [1, 32], strides = [1, 1]} : vector<1x128xf32> to vector<1x32xf32>
    %274 = vector.extract_strided_slice %271 {offsets = [0, 32], sizes = [1, 32], strides = [1, 1]} : vector<1x128xf32> to vector<1x32xf32>
    %275 = vector.extract_strided_slice %272 {offsets = [0, 64], sizes = [1, 32], strides = [1, 1]} : vector<1x128xf32> to vector<1x32xf32>
    %276 = vector.extract_strided_slice %271 {offsets = [0, 96], sizes = [1, 32], strides = [1, 1]} : vector<1x128xf32> to vector<1x32xf32>
    %277 = arith.mulf %274, %258 : vector<1x32xf32>
    %278 = arith.mulf %273, %275 : vector<1x32xf32>
    %279 = arith.addf %277, %278 : vector<1x32xf32>
    %280 = math.tanh %279 : vector<1x32xf32>
    %281 = arith.mulf %276, %280 : vector<1x32xf32>
    %c11_i32 = arith.constant 11 : i32
    %282 = arith.index_cast %c11_i32 : i32 to index
    %c0_66 = arith.constant 0 : index
    %c0_67 = arith.constant 0 : index
    %283 = vector.load %arg10[%282, %c0_66, %c0_67] : memref<16x1x128xf32, #tpu.memory_space<vmem>>, vector<1x1x128xf32>
    %284 = vector.shape_cast %283 : vector<1x1x128xf32> to vector<1x128xf32>
    %285 = arith.truncf %281 : vector<1x32xf32> to vector<1x32xbf16>
    %cst_68 = arith.constant dense<0.000000e+00> : vector<1x128xf32>
    %286 = tpu.matmul %285, %48, %cst_68 {dimension_numbers = #tpu.dot_dimension_numbers<[1], [0], [0], [1], [0, 0, 1, 1], [], []>} : vector<1x32xbf16>, vector<32x128xbf16>, vector<1x128xf32> -> vector<1x128xf32>
    %287 = arith.addf %284, %286 : vector<1x128xf32>
    %288 = arith.negf %287 : vector<1x128xf32>
    %289 = math.exp %288 : vector<1x128xf32>
    %cst_69 = arith.constant 1.000000e+00 : f32
    %290 = vector.broadcast %cst_69 : f32 to vector<1x128xf32>
    %291 = arith.addf %290, %289 : vector<1x128xf32>
    %292 = arith.divf %290, %291 : vector<1x128xf32>
    %293 = math.tanh %287 : vector<1x128xf32>
    %294 = vector.extract_strided_slice %292 {offsets = [0, 0], sizes = [1, 32], strides = [1, 1]} : vector<1x128xf32> to vector<1x32xf32>
    %295 = vector.extract_strided_slice %292 {offsets = [0, 32], sizes = [1, 32], strides = [1, 1]} : vector<1x128xf32> to vector<1x32xf32>
    %296 = vector.extract_strided_slice %293 {offsets = [0, 64], sizes = [1, 32], strides = [1, 1]} : vector<1x128xf32> to vector<1x32xf32>
    %297 = vector.extract_strided_slice %292 {offsets = [0, 96], sizes = [1, 32], strides = [1, 1]} : vector<1x128xf32> to vector<1x32xf32>
    %298 = arith.mulf %295, %279 : vector<1x32xf32>
    %299 = arith.mulf %294, %296 : vector<1x32xf32>
    %300 = arith.addf %298, %299 : vector<1x32xf32>
    %301 = math.tanh %300 : vector<1x32xf32>
    %302 = arith.mulf %297, %301 : vector<1x32xf32>
    %c12_i32 = arith.constant 12 : i32
    %303 = arith.index_cast %c12_i32 : i32 to index
    %c0_70 = arith.constant 0 : index
    %c0_71 = arith.constant 0 : index
    %304 = vector.load %arg10[%303, %c0_70, %c0_71] : memref<16x1x128xf32, #tpu.memory_space<vmem>>, vector<1x1x128xf32>
    %305 = vector.shape_cast %304 : vector<1x1x128xf32> to vector<1x128xf32>
    %306 = arith.truncf %302 : vector<1x32xf32> to vector<1x32xbf16>
    %cst_72 = arith.constant dense<0.000000e+00> : vector<1x128xf32>
    %307 = tpu.matmul %306, %48, %cst_72 {dimension_numbers = #tpu.dot_dimension_numbers<[1], [0], [0], [1], [0, 0, 1, 1], [], []>} : vector<1x32xbf16>, vector<32x128xbf16>, vector<1x128xf32> -> vector<1x128xf32>
    %308 = arith.addf %305, %307 : vector<1x128xf32>
    %309 = arith.negf %308 : vector<1x128xf32>
    %310 = math.exp %309 : vector<1x128xf32>
    %cst_73 = arith.constant 1.000000e+00 : f32
    %311 = vector.broadcast %cst_73 : f32 to vector<1x128xf32>
    %312 = arith.addf %311, %310 : vector<1x128xf32>
    %313 = arith.divf %311, %312 : vector<1x128xf32>
    %314 = math.tanh %308 : vector<1x128xf32>
    %315 = vector.extract_strided_slice %313 {offsets = [0, 0], sizes = [1, 32], strides = [1, 1]} : vector<1x128xf32> to vector<1x32xf32>
    %316 = vector.extract_strided_slice %313 {offsets = [0, 32], sizes = [1, 32], strides = [1, 1]} : vector<1x128xf32> to vector<1x32xf32>
    %317 = vector.extract_strided_slice %314 {offsets = [0, 64], sizes = [1, 32], strides = [1, 1]} : vector<1x128xf32> to vector<1x32xf32>
    %318 = vector.extract_strided_slice %313 {offsets = [0, 96], sizes = [1, 32], strides = [1, 1]} : vector<1x128xf32> to vector<1x32xf32>
    %319 = arith.mulf %316, %300 : vector<1x32xf32>
    %320 = arith.mulf %315, %317 : vector<1x32xf32>
    %321 = arith.addf %319, %320 : vector<1x32xf32>
    %322 = math.tanh %321 : vector<1x32xf32>
    %323 = arith.mulf %318, %322 : vector<1x32xf32>
    %c13_i32 = arith.constant 13 : i32
    %324 = arith.index_cast %c13_i32 : i32 to index
    %c0_74 = arith.constant 0 : index
    %c0_75 = arith.constant 0 : index
    %325 = vector.load %arg10[%324, %c0_74, %c0_75] : memref<16x1x128xf32, #tpu.memory_space<vmem>>, vector<1x1x128xf32>
    %326 = vector.shape_cast %325 : vector<1x1x128xf32> to vector<1x128xf32>
    %327 = arith.truncf %323 : vector<1x32xf32> to vector<1x32xbf16>
    %cst_76 = arith.constant dense<0.000000e+00> : vector<1x128xf32>
    %328 = tpu.matmul %327, %48, %cst_76 {dimension_numbers = #tpu.dot_dimension_numbers<[1], [0], [0], [1], [0, 0, 1, 1], [], []>} : vector<1x32xbf16>, vector<32x128xbf16>, vector<1x128xf32> -> vector<1x128xf32>
    %329 = arith.addf %326, %328 : vector<1x128xf32>
    %330 = arith.negf %329 : vector<1x128xf32>
    %331 = math.exp %330 : vector<1x128xf32>
    %cst_77 = arith.constant 1.000000e+00 : f32
    %332 = vector.broadcast %cst_77 : f32 to vector<1x128xf32>
    %333 = arith.addf %332, %331 : vector<1x128xf32>
    %334 = arith.divf %332, %333 : vector<1x128xf32>
    %335 = math.tanh %329 : vector<1x128xf32>
    %336 = vector.extract_strided_slice %334 {offsets = [0, 0], sizes = [1, 32], strides = [1, 1]} : vector<1x128xf32> to vector<1x32xf32>
    %337 = vector.extract_strided_slice %334 {offsets = [0, 32], sizes = [1, 32], strides = [1, 1]} : vector<1x128xf32> to vector<1x32xf32>
    %338 = vector.extract_strided_slice %335 {offsets = [0, 64], sizes = [1, 32], strides = [1, 1]} : vector<1x128xf32> to vector<1x32xf32>
    %339 = vector.extract_strided_slice %334 {offsets = [0, 96], sizes = [1, 32], strides = [1, 1]} : vector<1x128xf32> to vector<1x32xf32>
    %340 = arith.mulf %337, %321 : vector<1x32xf32>
    %341 = arith.mulf %336, %338 : vector<1x32xf32>
    %342 = arith.addf %340, %341 : vector<1x32xf32>
    %343 = math.tanh %342 : vector<1x32xf32>
    %344 = arith.mulf %339, %343 : vector<1x32xf32>
    %c14_i32 = arith.constant 14 : i32
    %345 = arith.index_cast %c14_i32 : i32 to index
    %c0_78 = arith.constant 0 : index
    %c0_79 = arith.constant 0 : index
    %346 = vector.load %arg10[%345, %c0_78, %c0_79] : memref<16x1x128xf32, #tpu.memory_space<vmem>>, vector<1x1x128xf32>
    %347 = vector.shape_cast %346 : vector<1x1x128xf32> to vector<1x128xf32>
    %348 = arith.truncf %344 : vector<1x32xf32> to vector<1x32xbf16>
    %cst_80 = arith.constant dense<0.000000e+00> : vector<1x128xf32>
    %349 = tpu.matmul %348, %48, %cst_80 {dimension_numbers = #tpu.dot_dimension_numbers<[1], [0], [0], [1], [0, 0, 1, 1], [], []>} : vector<1x32xbf16>, vector<32x128xbf16>, vector<1x128xf32> -> vector<1x128xf32>
    %350 = arith.addf %347, %349 : vector<1x128xf32>
    %351 = arith.negf %350 : vector<1x128xf32>
    %352 = math.exp %351 : vector<1x128xf32>
    %cst_81 = arith.constant 1.000000e+00 : f32
    %353 = vector.broadcast %cst_81 : f32 to vector<1x128xf32>
    %354 = arith.addf %353, %352 : vector<1x128xf32>
    %355 = arith.divf %353, %354 : vector<1x128xf32>
    %356 = math.tanh %350 : vector<1x128xf32>
    %357 = vector.extract_strided_slice %355 {offsets = [0, 0], sizes = [1, 32], strides = [1, 1]} : vector<1x128xf32> to vector<1x32xf32>
    %358 = vector.extract_strided_slice %355 {offsets = [0, 32], sizes = [1, 32], strides = [1, 1]} : vector<1x128xf32> to vector<1x32xf32>
    %359 = vector.extract_strided_slice %356 {offsets = [0, 64], sizes = [1, 32], strides = [1, 1]} : vector<1x128xf32> to vector<1x32xf32>
    %360 = vector.extract_strided_slice %355 {offsets = [0, 96], sizes = [1, 32], strides = [1, 1]} : vector<1x128xf32> to vector<1x32xf32>
    %361 = arith.mulf %358, %342 : vector<1x32xf32>
    %362 = arith.mulf %357, %359 : vector<1x32xf32>
    %363 = arith.addf %361, %362 : vector<1x32xf32>
    %364 = math.tanh %363 : vector<1x32xf32>
    %365 = arith.mulf %360, %364 : vector<1x32xf32>
    %c15_i32 = arith.constant 15 : i32
    %366 = arith.index_cast %c15_i32 : i32 to index
    %c0_82 = arith.constant 0 : index
    %c0_83 = arith.constant 0 : index
    %367 = vector.load %arg10[%366, %c0_82, %c0_83] : memref<16x1x128xf32, #tpu.memory_space<vmem>>, vector<1x1x128xf32>
    %368 = vector.shape_cast %367 : vector<1x1x128xf32> to vector<1x128xf32>
    %369 = arith.truncf %365 : vector<1x32xf32> to vector<1x32xbf16>
    %cst_84 = arith.constant dense<0.000000e+00> : vector<1x128xf32>
    %370 = tpu.matmul %369, %48, %cst_84 {dimension_numbers = #tpu.dot_dimension_numbers<[1], [0], [0], [1], [0, 0, 1, 1], [], []>} : vector<1x32xbf16>, vector<32x128xbf16>, vector<1x128xf32> -> vector<1x128xf32>
    %371 = arith.addf %368, %370 : vector<1x128xf32>
    %372 = arith.negf %371 : vector<1x128xf32>
    %373 = math.exp %372 : vector<1x128xf32>
    %cst_85 = arith.constant 1.000000e+00 : f32
    %374 = vector.broadcast %cst_85 : f32 to vector<1x128xf32>
    %375 = arith.addf %374, %373 : vector<1x128xf32>
    %376 = arith.divf %374, %375 : vector<1x128xf32>
    %377 = math.tanh %371 : vector<1x128xf32>
    %378 = vector.extract_strided_slice %376 {offsets = [0, 0], sizes = [1, 32], strides = [1, 1]} : vector<1x128xf32> to vector<1x32xf32>
    %379 = vector.extract_strided_slice %376 {offsets = [0, 32], sizes = [1, 32], strides = [1, 1]} : vector<1x128xf32> to vector<1x32xf32>
    %380 = vector.extract_strided_slice %377 {offsets = [0, 64], sizes = [1, 32], strides = [1, 1]} : vector<1x128xf32> to vector<1x32xf32>
    %381 = vector.extract_strided_slice %376 {offsets = [0, 96], sizes = [1, 32], strides = [1, 1]} : vector<1x128xf32> to vector<1x32xf32>
    %382 = arith.mulf %379, %363 : vector<1x32xf32>
    %383 = arith.mulf %378, %380 : vector<1x32xf32>
    %384 = arith.addf %382, %383 : vector<1x32xf32>
    %385 = math.tanh %384 : vector<1x32xf32>
    %386 = arith.mulf %381, %385 : vector<1x32xf32>
    %c16_i32 = arith.constant 16 : i32
    %387 = arith.truncf %386 : vector<1x32xf32> to vector<1x32xbf16>
    %c0_86 = arith.constant 0 : index
    %c0_87 = arith.constant 0 : index
    %388 = vector.load %arg7[%c0_86, %c0_87] : memref<32x8xbf16, #tpu.memory_space<vmem>>, vector<32x8xbf16>
    %cst_88 = arith.constant dense<0.000000e+00> : vector<1x8xf32>
    %389 = tpu.matmul %387, %388, %cst_88 {dimension_numbers = #tpu.dot_dimension_numbers<[1], [0], [0], [1], [0, 0, 1, 1], [], []>} : vector<1x32xbf16>, vector<32x8xbf16>, vector<1x8xf32> -> vector<1x8xf32>
    %c0_89 = arith.constant 0 : index
    %c0_90 = arith.constant 0 : index
    %390 = vector.load %arg8[%c0_89, %c0_90] : memref<1x8xf32, #tpu.memory_space<vmem>>, vector<1x8xf32>
    %391 = arith.addf %389, %390 : vector<1x8xf32>
    %c0_91 = arith.constant 0 : index
    %c0_92 = arith.constant 0 : index
    %c0_93 = arith.constant 0 : index
    %392 = vector.load %arg9[%c0_91, %c0_92, %c0_93] : memref<1x1x8xf32, #tpu.memory_space<vmem>>, vector<1x1x8xf32>
    %393 = vector.shape_cast %392 : vector<1x1x8xf32> to vector<1x8xf32>
    %394 = vector.shape_cast %391 : vector<1x8xf32> to vector<1x1x8xf32>
    tpu.vector_store %arg9[%c0_91, %c0_92, %c0_93], %394 {strides = array<i32>} : memref<1x1x8xf32, #tpu.memory_space<vmem>>, vector<1x1x8xf32>,
    return
  }
  func.func @transform_0(%arg0: i32) -> (i32, i32, i32) {
    %c0_i32 = arith.constant 0 : i32
    %c0_i32_0 = arith.constant 0 : i32
    %c0_i32_1 = arith.constant 0 : i32
    return %arg0, %c0_i32, %c0_i32_0 : i32, i32, i32
  }
  func.func @transform_1(%arg0: i32) -> (i32, i32) {
    %c0_i32 = arith.constant 0 : i32
    %c0_i32_0 = arith.constant 0 : i32
    %c0_i32_1 = arith.constant 0 : i32
    return %c0_i32, %c0_i32_0 : i32, i32
  }
  func.func @transform_2(%arg0: i32) -> (i32, i32) {
    %c0_i32 = arith.constant 0 : i32
    %c0_i32_0 = arith.constant 0 : i32
    %c0_i32_1 = arith.constant 0 : i32
    return %c0_i32, %c0_i32_0 : i32, i32
  }
  func.func @transform_3(%arg0: i32) -> (i32, i32) {
    %c0_i32 = arith.constant 0 : i32
    %c0_i32_0 = arith.constant 0 : i32
    %c0_i32_1 = arith.constant 0 : i32
    return %c0_i32, %c0_i32_0 : i32, i32
  }
  func.func @transform_4(%arg0: i32) -> (i32, i32) {
    %c0_i32 = arith.constant 0 : i32
    %c0_i32_0 = arith.constant 0 : i32
    %c0_i32_1 = arith.constant 0 : i32
    return %c0_i32, %c0_i32_0 : i32, i32
  }
  func.func @transform_5(%arg0: i32) -> (i32, i32) {
    %c0_i32 = arith.constant 0 : i32
    %c0_i32_0 = arith.constant 0 : i32
    %c0_i32_1 = arith.constant 0 : i32
    return %c0_i32, %c0_i32_0 : i32, i32
  }
  func.func @transform_6(%arg0: i32) -> (i32, i32) {
    %c0_i32 = arith.constant 0 : i32
    %c0_i32_0 = arith.constant 0 : i32
    %c0_i32_1 = arith.constant 0 : i32
    return %c0_i32, %c0_i32_0 : i32, i32
  }
  func.func @transform_7(%arg0: i32) -> (i32, i32) {
    %c0_i32 = arith.constant 0 : i32
    %c0_i32_0 = arith.constant 0 : i32
    %c0_i32_1 = arith.constant 0 : i32
    return %c0_i32, %c0_i32_0 : i32, i32
  }
  func.func @transform_8(%arg0: i32) -> (i32, i32, i32) {
    %c0_i32 = arith.constant 0 : i32
    %c0_i32_0 = arith.constant 0 : i32
    %c0_i32_1 = arith.constant 0 : i32
    return %arg0, %c0_i32, %c0_i32_0 : i32, i32, i32
  }
}

</mosaic_0001>

<bundles_post_ra>
// kernel: tpu_custom_call.1
= control target key start
LH: loop header
LB: loop body
LE: loop exit
PB: predicated region body
PF: predicated region fallthrough
CT: control target
= control target key end

     0   :  { %13 = vsyncpa [#allocation4], 0  ;;  %s4361_s0 = inlined_call_operand.vmem [shape: bf16[2,16,16], index: 0, kind: input, shape index: {}]   ;;  %s4362_s1 = inlined_call_operand.hbm [shape: bf16[9,64], index: 1, kind: input, shape index: {}]   ;;  %s4363_s2 = inlined_call_operand.vmem [shape: f32[1,64], index: 2, kind: input, shape index: {}]   ;;  %s4364_s3 = inlined_call_operand.hbm [shape: bf16[64,128], index: 3, kind: input, shape index: {}]   ;;  %s4365_s4 = inlined_call_operand.vmem [shape: bf16[32,128], index: 4, kind: input, shape index: {}]   ;;  %s4366_s5 = inlined_call_operand.vmem [shape: f32[1,128], index: 5, kind: input, shape index: {}]   ;;  %s4367_s6 = inlined_call_operand.vmem [shape: bf16[32,8], index: 6, kind: input, shape index: {}]   ;;  %s4368_s7 = inlined_call_operand.vmem [shape: f32[1,8], index: 7, kind: input, shape index: {}]   ;;  %s4369_s8 = inlined_call_operand.hbm [shape: f32[2,1,8], index: 8, kind: output, shape index: {}]  }
   0x1   :  { %14 = vsyncpa [#allocation7], 0 }
   0x2   :  { %15 = vsyncpa [#allocation5], 0 }
   0x3   :  { %17 = vsyncpa [#allocation5 + $0x1], 0  ;;  %s3636_s27 = smov 0   ;;  %s3638_s28 = smov 0  }
   0x4   :  { %s3640_s29 = smov 0   ;;  %s3642_s30 = smov 0  }
   0x5 LB: > { %4374 = sst [smem:[#allocation12_spill]] %s3570_s29  ;;  %s3657_s9 = sadd.s32 4294967295, %s3574_s30   ;;  %s3574_s30 = sphi %s3642_s30, %s4391_s30   ;;  %s3570_s29 = sphi %s3640_s29, %s4388_s29   ;;  %s3566_s28 = sphi %s3638_s28, %s4390_s28   ;;  %s3562_s27 = sphi %s3636_s27, %s4389_s27  }
   0x6   : > { %s2907_s10 = sadd.s32 4294967294, %s3574_s30   ;;  %s3661_s11 = sadd.s32 1, %s3574_s30  }
   0x7   : > { %s203_s12 = sadd.s32 1, %s3570_s29  ;;  %s200_s13 = ssub.s32 %s3574_s30, %s3661_s11 }
   0x8   : > { %p213_p0 = scmp.ne.s32.totalorder %s3570_s29, %s3566_s28  ;;  %p201_p1 = scmp.eq.s32.totalorder %s200_s13, 0 }
   0x9   : > { %p214_p2 = scmp.eq.s32.totalorder %s3657_s9, 1  ;;  %p219_p3 = scmp.ne.s32.totalorder %s3566_s28, %s3562_s27 }
   0xa   : > { %p220_p4 = scmp.eq.s32.totalorder %s2907_s10, 1  ;;  %p2908_p7 = scmp.ge.s32.totalorder %s3574_s30, 1 }
   0xb   : > { %s3672_s14 = scalar_select %p201_p1, %s3570_s29, %s203_s12  }
   0xc   : > { %p3674_p5 = por %p214_p2, %p213_p0  ;;  %p3678_p6 = por %p220_p4, %p219_p3 }
   0xd   : > { %4375 = sst [smem:[#allocation13_spill]] %s3672_s14  ;;  %p227_p8 = scmp.lt.s32.totalorder %s3574_s30, 3 }
   0xe   : > { %s4376_s15 = scalar_select %p3674_p5, 1, 0 }
   0xf   : > { %s4377_s16 = scalar_select %p3678_p6, 1, 0 }
  0x10   : > { %p4370_p9 = scmp.eq.s32.totalorder %s3657_s9, 0  ;;  %p3685_p10 = pnand %p2908_p7, %p227_p8 }
  0x11   : > { %s3576_s18 = smov [#allocation3]   ;;  %s3577_s21 = smov [#allocation6]  }
  0x12   : > { %s4378_s17 = scalar_select %p3685_p10, 1, 0 }
  0x13   : > { %s239_s19 = sshll.u32 %s3576_s18, 4  ;;  %p3246_p11 = pneg %p3685_p10  ;;  %s240_s19 = int_to_ptr.vmem [resolvable:$true] %s239_s19 }
  0x14   : > { %s255_s22 = sshll.u32 %s3577_s21, 4  ;;  %s3448_s25 = scalar_lea.hbm %s4362_s1, 128  ;;  %s3697_s22 = int_to_ptr.vmem [resolvable:$true] %s255_s22 }
  0x15   : > { %p3693_p12 = pnand %p4370_p9, %p3246_p11  ;;  %p3449_p13 = scmp.ne.s32.totalorder %s4362_s1, %s3448_s25 }
  0x16   : > { %p3455_p3 = scmp.lt.u32.totalorder %s3448_s25, %s4362_s1 }
  0x17   : > { %p3450_p0 = pneg %p3693_p12 }
  0x19   : > { %p3451_p1 = pnand %p3450_p0, %p3449_p13 }
  0x1b   : > { %p3452_p2 = pneg %p3451_p1 }
  0x1d   : > { %p3457_p4 = pnand %p3455_p3, %p3452_p2 }
  0x1f   : > { %3460 = shalt.err (!%p3457_p4)
}
  0x20   : > { %s3461_s18 = scalar_lea.vmem %s240_s19, 128  ;;  %p3469_p9 = scmp.lt.s32.totalorder %s240_s19, %s240_s19 }
  0x21   : > { %p3462_p7 = scmp.ne.s32.totalorder %s240_s19, %s3461_s18  ;;  %p3470_p6 = scmp.lt.s32.totalorder %s3461_s18, %s3461_s18 }
  0x23   : > { %p3464_p8 = pnand %p3462_p7, %p3450_p0  ;;  %p3471_p5 = por %p3470_p6, %p3469_p9 }
  0x25   : > { %p3465_p11 = pneg %p3464_p8 }
  0x27   : > { %p3472_p10 = pnand %p3471_p5, %p3465_p11 }
  0x29   : > { %3475 = shalt.err (!%p3472_p10)
}
  0x2a   : > { %s3578_s21 = smov 64   ;;  %s3579_s23 = smov 4  }
  0x2b   : > { %3249 = dma.hbm_to_vmem [thread:$0]  (!%p3693_p12), %s4362_s1, 128, %s240_s19, [#allocation4], %s3578_s21, %s3578_s21, %s3579_s23  }
  0x2c   : > { %s3476_s12 = scalar_lea.hbm %s4364_s3, 512 }
  0x2d   : > { %p3477_p13 = scmp.ne.s32.totalorder %s4364_s3, %s3476_s12  ;;  %p3483_p9 = scmp.lt.u32.totalorder %s3476_s12, %s4364_s3 }
  0x2f   : > { %p3479_p5 = pnand %p3477_p13, %p3450_p0 }
  0x31   : > { %p3480_p6 = pneg %p3479_p5 }
  0x33   : > { %p3485_p10 = pnand %p3483_p9, %p3480_p6 }
  0x35   : > { %3488 = shalt.err (!%p3485_p10)
}
  0x36   : > { %s3489_s19 = scalar_lea.vmem %s3697_s22, 512  ;;  %p3497_p4 = scmp.lt.s32.totalorder %s3697_s22, %s3697_s22 }
  0x37   : > { %p3490_p1 = scmp.ne.s32.totalorder %s3697_s22, %s3489_s19  ;;  %p3498_p7 = scmp.lt.s32.totalorder %s3489_s19, %s3489_s19 }
  0x39   : > { %p3492_p2 = pnand %p3490_p1, %p3450_p0  ;;  %p3499_p8 = por %p3498_p7, %p3497_p4 }
  0x3b   : > { %p3493_p3 = pneg %p3492_p2 }
  0x3d   : > { %p3500_p11 = pnand %p3499_p8, %p3493_p3 }
  0x3f   : > { %3503 = shalt.err (!%p3500_p11)
}
  0x40   : > { %3252 = dma.hbm_to_vmem [thread:$0]  (!%p3693_p12), %s4364_s3, 512, %s3697_s22, [#allocation7], %s3578_s21, %s3578_s21, %s3579_s23  }
  0x41   : > { %p4380_p13 = scmp.ne.s32.totalorder %s4378_s17, 0 }
  0x42   : > { %p4381_p5 = scmp.eq.s32.totalorder (!%p4380_p13), %s3657_s9, 0 }
  0x43   : > { %291 = sbr.rel (%p4380_p13) target bundleno = 12195 (0x2fa3), region = 52 }
  0x4a   : > { %3549 = dma.done.wait (%p4381_p5), [#allocation4], 128   ;;  %p4382_p0 = pmov %p4381_p5 }
  0x4c   : > { %3551 = vsyncadd (%p4382_p0), [#allocation4], 4294967168  ;;  %p4383_p6 = pmov %p4382_p0 }
  0x4d   : > { %p4384_p9 = pmov %p4382_p0 }
  0x4e   : > { %3553 = dma.done.wait (%p4383_p6), [#allocation7], 512  }
  0x4f   : > { %3555 = vsyncadd (%p4384_p9), [#allocation7], 4294966784  ;;  %p328_p10 = scmp.lt.s32.totalorder %s3657_s9, 1  ;;  %vm351_vm0 = vsmask.f32 256  ;;  %vm350_vm1 = vcmask 1040384   ;;  %v372_v7 = vlaneseq }
  0x50   : > { %vm352_vm2 = vmand %vm350_vm1, %vm351_vm0  ;;  %s3580_s24 = smov 1   ;;  %vm361_vm3 = vcmask 7168   ;;  %vm367_vm4 = vcmask 138240   ;;  %v3309_v36 = vld [vmem:[#allocation3] sm:$0x1f]   ;;  %vm886_vm5 = vcmask 1043456  }
  0x51   : > { %s329_s20 = scalar_select %p328_p10, %s3657_s9, 1  ;;  %v3761_v8 = vshrl.u32 %v372_v7, 7  ;;  %vm887_vm6 = vcmask 1044480   ;;  %v3581_v37 = vmov 65535   ;;  %vm698_vm7 = vcmask 15360  }
  0x52   : > { %v888_v38 = vsel %vm886_vm5, 4294967295, %v3581_v37  ;;  %vm731_vm8 = vcmask 23552   ;;  %vm749_vm9 = vcmask 31744   ;;  %vm767_vm10 = vcmask 39936   ;;  %s3588_s14 = smov 64   ;;  %s326_s12 = sand.u32 1, %s3566_s28  }
  0x53   : > { %s2980_s22 = sshll.u32 %s329_s20, 3  ;;  %v374_v11 = vsub.s32 0, %v3761_v8  ;;  %v391_v16 = vsub.s32 1, %v3761_v8  ;;  %v405_v24 = vsub.s32 2, %v3761_v8  ;;  %v419_v27 = vsub.s32 3, %v3761_v8  ;;  %s3589_s20 = smov 32  }
  0x54   : > { %s332_s23 = scalar_lea.vmem %s4361_s0, %s2980_s22  ;;  %v433_v29 = vsub.s32 4, %v3761_v8  ;;  %v447_v32 = vsub.s32 5, %v3761_v8  ;;  %v889_v39 = vsel %vm887_vm6, %v888_v38, 0  ;;  %v461_v43 = vsub.s32 6, %v3761_v8  ;;  %s2977_s19 = sshll.u32 %s3657_s9, 4 }
  0x55   : > { %v3308_v0 = vld [vmem:[%s332_s23] sm:$0xff]   ;;  %v891_v40 = vand.u32 %v3309_v36, %v889_v39  ;;  %v475_v47 = vsub.s32 7, %v3761_v8  ;;  %vm785_vm11 = vcmask 48128   ;;  %vm803_vm12 = vcmask 56320   ;;  %s327_s29 = scalar_lea.vmem [#allocation8], %s326_s12  ;;  %s2818_s9 = scalar_lea.sflag [#allocation5], %s326_s12 }
  0x56   : > { %v342_v1 = vshrl.u32 %v3308_v0, 16  ;;  %v345_v2 = vshll.u32 %v3308_v0, 16  ;;  %vm821_vm13 = vcmask 64512   ;;  %vm853_vm14 = vcmask 72704   ;;  %s2830_s22 = sshll.u32 %s327_s29, 4  ;;  %p4385_p1 = scmp.ne.s32.totalorder %s4376_s15, 0  ;;  %s4321_s22 = int_to_ptr.vmem [resolvable:$true] %s2830_s22 }
  0x57   : > { %3054 = vmatprep.subr.bf16.mxu0 %v891_v40  ;;  %vm3583_vm15 = vmmov 0   ;;  %vm1086_vm0 = vcmask 523264   ;;  %vm1304_vm1 = vcmask 1041409   ;;  %vm1316_vm5 = vcmask 1045509   ;;  %s3504_s17 = scalar_lea.vmem %s4321_s22, 16  ;;  %s3590_s23 = smov [#allocation8]  }
  0x58   : > { %v344_v3 = vrot.slane %v342_v1, 7  ;;  %3055 = vmatpush3.bf16.msra.mxu0 %v891_v40  ;;  %vm1319_vm6 = vcmask 1046534   ;;  %p3505_p12 = scmp.ne.s32.totalorder %s4321_s22, %s3504_s17 }
  0x5a   : > { %v347_v4 = vor.u32 %v345_v2, %v344_v3  ;;  %v354_v6 = vsel %vm352_vm2, %v344_v3, 0  ;;  %p3506_p2 = pnand %p3505_p12, %p4385_p1 }
  0x5c   : > { %v353_v5 = vsel %vm352_vm2, 0, %v347_v4  ;;  %vm1307_vm2 = vcmask 1042434   ;;  %p3507_p3 = pneg %p3506_p2 }
  0x5d   : > { %357 = vrot.lane.b32.xlu0 %v353_v5, %s3580_s24 }
  0x61   : > { %359 = vrot.lane.b32.xlu0 %v354_v6, %s3580_s24  ;;  %s3508_s24 = sshll.u32 %s3590_s23, 4  ;;  %s3509_s24 = int_to_ptr.vmem [resolvable:$false] %s3508_s24 }
  0x62   : > { %s3510_s25 = scalar_lea.vmem %s3509_s24, 32  ;;  %p3511_p4 = scmp.lt.s32.totalorder %s4321_s22, %s3509_s24 }
  0x63   : > { %p3512_p7 = scmp.lt.s32.totalorder %s3510_s25, %s3504_s17 }
  0x65   : > { %p3513_p8 = por %p3512_p7, %p3511_p4 }
  0x67   : > { %p3514_p11 = pnand %p3513_p8, %p3507_p3 }
  0xcf   : > { %v358_v9 = vpop.permute.xlu0 %357 }
  0xd0   : > { %v364_v10 = vsel %vm361_vm3, 0, %v358_v9 }
  0xd1   : > { %v368_v12 = vsel %vm367_vm4, %v364_v10, 0 }
  0xd2   : > { %v3765_v13 = vpack.i.b16 %v368_v12, %v368_v12  ;;  %v379_v30 = vshrl.u32 %v368_v12, 16 }
  0xd3   : > { %v360_v14 = vpop.permute.xlu0 %359 }
  0xd4   : > { %v375_v15 = vrot.slane %v3765_v13, %v374_v11  ;;  %v366_v17 = vsel %vm361_vm3, 0, %v360_v14  ;;  %v392_v18 = vrot.slane %v3765_v13, %v391_v16  ;;  %v406_v26 = vrot.slane %v3765_v13, %v405_v24 }
  0xd5   : > { %v369_v19 = vsel %vm367_vm4, %v366_v17, 0  ;;  %v420_v28 = vrot.slane %v3765_v13, %v419_v27  ;;  %v434_v31 = vrot.slane %v3765_v13, %v433_v29  ;;  %v380_v33 = vpack.i.b16 %v379_v30, %v379_v30 }
  0xd6   : > { %553 = vbcast.lane.c.b16.xlu0 %v375_v15, 258  ;;  %377 = vbcast.lane.c.b16.xlu1 %v375_v15, 256  ;;  %v615_v20 = vpack.i.b16 %v369_v19, %v369_v19  ;;  %v632_v21 = vshrl.u32 %v369_v19, 16  ;;  %v448_v34 = vrot.slane %v3765_v13, %v447_v32  ;;  %v462_v44 = vrot.slane %v3765_v13, %v461_v43 }
  0xd7   : > { %v385_v35 = vrot.slane %v380_v33, %v374_v11  ;;  %v399_v41 = vrot.slane %v380_v33, %v391_v16  ;;  %v413_v42 = vrot.slane %v380_v33, %v405_v24  ;;  %v427_v45 = vrot.slane %v380_v33, %v419_v27 }
  0xd8   : > { %v633_v22 = vpack.i.b16 %v632_v21, %v632_v21  ;;  %v3771_v23 = vrot.slane %v615_v20, %v374_v11  ;;  %v441_v46 = vrot.slane %v380_v33, %v433_v29  ;;  %v476_v48 = vrot.slane %v3765_v13, %v475_v47 }
  0xd9   : > { %v455_v49 = vrot.slane %v380_v33, %v447_v32  ;;  %v469_v50 = vrot.slane %v380_v33, %v461_v43  ;;  %v483_v51 = vrot.slane %v380_v33, %v475_v47  ;;  %vm1313_vm4 = vcmask 1044484  }
  0xda   : > { %394 = vbcast.lane.c.b16.xlu0 %v392_v18, 256  ;;  %489 = vbcast.lane.c.b16.xlu1 %v375_v15, 257  ;;  %v3774_v25 = vrot.slane %v633_v22, %v374_v11 }
  0xde   : > { %561 = vbcast.lane.c.b16.xlu0 %v392_v18, 258  ;;  %497 = vbcast.lane.c.b16.xlu1 %v392_v18, 257 }
  0xe2   : > { %408 = vbcast.lane.c.b16.xlu0 %v406_v26, 256  ;;  %505 = vbcast.lane.c.b16.xlu1 %v406_v26, 257 }
  0xe6   : > { %569 = vbcast.lane.c.b16.xlu0 %v406_v26, 258  ;;  %513 = vbcast.lane.c.b16.xlu1 %v420_v28, 257 }
  0xea   : > { %422 = vbcast.lane.c.b16.xlu0 %v420_v28, 256  ;;  %521 = vbcast.lane.c.b16.xlu1 %v434_v31, 257 }
  0xee   : > { %577 = vbcast.lane.c.b16.xlu0 %v420_v28, 258  ;;  %529 = vbcast.lane.c.b16.xlu1 %v448_v34, 257 }
  0xf2   : > { %436 = vbcast.lane.c.b16.xlu0 %v434_v31, 256  ;;  %493 = vbcast.lane.c.b16.xlu1 %v385_v35, 257 }
  0xf6   : > { %585 = vbcast.lane.c.b16.xlu0 %v434_v31, 258  ;;  %557 = vbcast.lane.c.b16.xlu1 %v385_v35, 258 }
  0xfa   : > { %387 = vbcast.lane.c.b16.xlu0 %v385_v35, 256  ;;  %401 = vbcast.lane.c.b16.xlu1 %v399_v41, 256 }
  0xfe   : > { %450 = vbcast.lane.c.b16.xlu0 %v448_v34, 256  ;;  %565 = vbcast.lane.c.b16.xlu1 %v399_v41, 258 }
 0x102   : > { %501 = vbcast.lane.c.b16.xlu0 %v399_v41, 257  ;;  %415 = vbcast.lane.c.b16.xlu1 %v413_v42, 256 }
 0x106   : > { %593 = vbcast.lane.c.b16.xlu0 %v448_v34, 258  ;;  %537 = vbcast.lane.c.b16.xlu1 %v462_v44, 257 }
 0x10a   : > { %509 = vbcast.lane.c.b16.xlu0 %v413_v42, 257  ;;  %573 = vbcast.lane.c.b16.xlu1 %v413_v42, 258 }
 0x10e   : > { %464 = vbcast.lane.c.b16.xlu0 %v462_v44, 256  ;;  %429 = vbcast.lane.c.b16.xlu1 %v427_v45, 256 }
 0x112   : > { %517 = vbcast.lane.c.b16.xlu0 %v427_v45, 257  ;;  %581 = vbcast.lane.c.b16.xlu1 %v427_v45, 258 }
 0x116   : > { %601 = vbcast.lane.c.b16.xlu0 %v462_v44, 258  ;;  %443 = vbcast.lane.c.b16.xlu1 %v441_v46, 256 }
 0x11a   : > { %525 = vbcast.lane.c.b16.xlu0 %v441_v46, 257  ;;  %545 = vbcast.lane.c.b16.xlu1 %v476_v48, 257 }
 0x11e   : > { %478 = vbcast.lane.c.b16.xlu0 %v476_v48, 256  ;;  %589 = vbcast.lane.c.b16.xlu1 %v441_v46, 258 }
 0x122   : > { %533 = vbcast.lane.c.b16.xlu0 %v455_v49, 257  ;;  %457 = vbcast.lane.c.b16.xlu1 %v455_v49, 256 }
 0x126   : > { %609 = vbcast.lane.c.b16.xlu0 %v476_v48, 258  ;;  %597 = vbcast.lane.c.b16.xlu1 %v455_v49, 258 }
 0x12a   : > { %541 = vbcast.lane.c.b16.xlu0 %v469_v50, 257  ;;  %471 = vbcast.lane.c.b16.xlu1 %v469_v50, 256 }
 0x12e   : > { %626 = vbcast.lane.c.b16.xlu1 %v3771_v23, 257  ;;  %622 = vbcast.lane.c.b16.xlu0 %v3771_v23, 256 }
 0x132   : > { %605 = vbcast.lane.c.b16.xlu1 %v469_v50, 258  ;;  %549 = vbcast.lane.c.b16.xlu0 %v483_v51, 257 }
 0x136   : > { %485 = vbcast.lane.c.b16.xlu1 %v483_v51, 256  ;;  %630 = vbcast.lane.c.b16.xlu0 %v3771_v23, 258 }
 0x13a   : > { %613 = vbcast.lane.c.b16.xlu1 %v483_v51, 258  ;;  %644 = vbcast.lane.c.b16.xlu0 %v3774_v25, 257 }
 0x13e   : > { %640 = vbcast.lane.c.b16.xlu1 %v3774_v25, 256 }
 0x142   : > { %648 = vbcast.lane.c.b16.xlu1 %v3774_v25, 258 }
 0x148   : > { %v378_v52 = vpop.permute.xlu1 %377  ;;  %v554_v53 = vpop.permute.xlu0 %553 }
 0x14c   : > { %v490_v54 = vpop.permute.xlu1 %489  ;;  %v395_v55 = vpop.permute.xlu0 %394 }
 0x14d   : > { %v652_v6 = vsel %vm361_vm3, %v378_v52, %v490_v54 }
 0x14e   : > { %v700_v9 = vsel %vm698_vm7, %v652_v6, %v554_v53 }
 0x150   : > { %v498_v56 = vpop.permute.xlu1 %497  ;;  %v562_v57 = vpop.permute.xlu0 %561 }
 0x151   : > { %v658_v17 = vsel %vm361_vm3, %v395_v55, %v498_v56 }
 0x152   : > { %v704_v25 = vsel %vm698_vm7, %v658_v17, %v562_v57 }
 0x154   : > { %v506_v58 = vpop.permute.xlu1 %505  ;;  %v409_v59 = vpop.permute.xlu0 %408 }
 0x155   : > { %v664_v44 = vsel %vm361_vm3, %v409_v59, %v506_v58 }
 0x158   : > { %v3793_v60 = vpop.permute.xlu1 %513  ;;  %v570_v61 = vpop.permute.xlu0 %569 }
 0x159   : > { %v708_v45 = vsel %vm698_vm7, %v664_v44, %v570_v61 }
 0x15c   : > { %v3795_v62 = vpop.permute.xlu1 %521  ;;  %v3797_v63 = vpop.permute.xlu0 %422 }
 0x160   : > { %v3799_v0 = vpop.permute.xlu1 %529  ;;  %v3801_v1 = vpop.permute.xlu0 %577 }
 0x164   : > { %v494_v2 = vpop.permute.xlu1 %493  ;;  %v3803_v3 = vpop.permute.xlu0 %436 }
 0x168   : > { %v558_v4 = vpop.permute.xlu1 %557  ;;  %v3805_v5 = vpop.permute.xlu0 %585 }
 0x16c   : > { %v402_v7 = vpop.permute.xlu1 %401  ;;  %v388_v10 = vpop.permute.xlu0 %387 }
 0x16d   : > { %v655_v11 = vsel %vm361_vm3, %v388_v10, %v494_v2  ;;  %v732_v12 = vsel %vm731_vm8, %v700_v9, %v388_v10  ;;  %v734_v27 = vsel %vm731_vm8, %v704_v25, %v402_v7 }
 0x16e   : > { %v702_v13 = vsel %vm698_vm7, %v655_v11, %v558_v4  ;;  %v750_v14 = vsel %vm749_vm9, %v732_v12, %v494_v2 }
 0x16f   : > { %v733_v15 = vsel %vm731_vm8, %v702_v13, %v395_v55  ;;  %v768_v16 = vsel %vm767_vm10, %v750_v14, %v558_v4 }
 0x170   : > { %v751_v18 = vsel %vm749_vm9, %v733_v15, %v498_v56  ;;  %v566_v19 = vpop.permute.xlu1 %565  ;;  %v3817_v20 = vpop.permute.xlu0 %450  ;;  %v786_v21 = vsel %vm785_vm11, %v768_v16, %v395_v55 }
 0x171   : > { %v804_v22 = vsel %vm803_vm12, %v786_v21, %v498_v56  ;;  %v769_v23 = vsel %vm767_vm10, %v751_v18, %v562_v57 }
 0x172   : > { %v822_v24 = vsel %vm821_vm13, %v804_v22, %v562_v57  ;;  %v787_v28 = vsel %vm785_vm11, %v769_v23, %v402_v7 }
 0x173   : > { %3056 = vmatprep.mubr.msk.bf16.mxu0 %vm853_vm14, %v822_v24 }
 0x174   : > { %v416_v26 = vpop.permute.xlu1 %415  ;;  %v502_v29 = vpop.permute.xlu0 %501 }
 0x175   : > { %v661_v30 = vsel %vm361_vm3, %v402_v7, %v502_v29  ;;  %v752_v31 = vsel %vm749_vm9, %v734_v27, %v502_v29  ;;  %v805_v32 = vsel %vm803_vm12, %v787_v28, %v502_v29  ;;  %v736_v46 = vsel %vm731_vm8, %v708_v45, %v416_v26 }
 0x176   : > { %v706_v33 = vsel %vm698_vm7, %v661_v30, %v566_v19  ;;  %v770_v34 = vsel %vm767_vm10, %v752_v31, %v566_v19  ;;  %v823_v35 = vsel %vm821_vm13, %v805_v32, %v566_v19  ;;  %v670_v7 = vsel %vm361_vm3, %v3797_v63, %v3793_v60 }
 0x177   : > { %v735_v36 = vsel %vm731_vm8, %v706_v33, %v409_v59  ;;  %3057 = vmatmul.mubr.msk.bf16.vlgmr.msra.gmra.mrb[0].mxu0 %vm853_vm14, %v823_v35  ;;  %v788_v37 = vsel %vm785_vm11, %v770_v34, %v409_v59  ;;  %v712_v9 = vsel %vm698_vm7, %v670_v7, %v3801_v1  ;;  %v676_v28 = vsel %vm361_vm3, %v3803_v3, %v3795_v62 }
 0x178   : > { %v3836_v38 = vpop.permute.xlu1 %537  ;;  %v3838_v39 = vpop.permute.xlu0 %593  ;;  %v806_v40 = vsel %vm803_vm12, %v788_v37, %v506_v58  ;;  %v753_v41 = vsel %vm749_vm9, %v735_v36, %v506_v58  ;;  %v716_v29 = vsel %vm698_vm7, %v676_v28, %v3805_v5 }
 0x179   : > { %v824_v42 = vsel %vm821_vm13, %v806_v40, %v570_v61  ;;  %v771_v43 = vsel %vm767_vm10, %v753_v41, %v570_v61  ;;  %v682_v41 = vsel %vm361_vm3, %v3817_v20, %v3799_v0 }
 0x17a   : > { %3060 = vmatprep.mubr.msk.bf16.mxu0 %vm853_vm14, %v824_v42  ;;  %v789_v48 = vsel %vm785_vm11, %v771_v43, %v416_v26  ;;  %v720_v44 = vsel %vm698_vm7, %v682_v41, %v3838_v39 }
 0x17c   : > { %v574_v47 = vpop.permute.xlu1 %573  ;;  %v510_v49 = vpop.permute.xlu0 %509 }
 0x17d   : > { %v667_v50 = vsel %vm361_vm3, %v416_v26, %v510_v49  ;;  %v754_v51 = vsel %vm749_vm9, %v736_v46, %v510_v49  ;;  %v807_v52 = vsel %vm803_vm12, %v789_v48, %v510_v49 }
 0x17e   : > { %v710_v53 = vsel %vm698_vm7, %v667_v50, %v574_v47  ;;  %v772_v54 = vsel %vm767_vm10, %v754_v51, %v574_v47  ;;  %v825_v55 = vsel %vm821_vm13, %v807_v52, %v574_v47 }
 0x17f   : > { %v737_v56 = vsel %vm731_vm8, %v710_v53, %v3797_v63  ;;  %3061 = vmatmul.mubr.msk.bf16.gmra.mrb[4].mxu0 %vm853_vm14, %v825_v55  ;;  %v790_v57 = vsel %vm785_vm11, %v772_v54, %v3797_v63 }
 0x180   : > { %v430_v58 = vpop.permute.xlu1 %429  ;;  %v755_v59 = vsel %vm749_vm9, %v737_v56, %v3793_v60  ;;  %v3862_v61 = vpop.permute.xlu0 %464  ;;  %v808_v2 = vsel %vm803_vm12, %v790_v57, %v3793_v60 }
 0x181   : > { %v773_v4 = vsel %vm767_vm10, %v755_v59, %v3801_v1  ;;  %v826_v6 = vsel %vm821_vm13, %v808_v2, %v3801_v1  ;;  %v738_v10 = vsel %vm731_vm8, %v712_v9, %v430_v58  ;;  %v688_v9 = vsel %vm361_vm3, %v3862_v61, %v3836_v38 }
 0x182   : > { %3064 = vmatprep.mubr.msk.bf16.mxu0 %vm853_vm14, %v826_v6  ;;  %v791_v11 = vsel %vm785_vm11, %v773_v4, %v430_v58 }
 0x184   : > { %v582_v12 = vpop.permute.xlu1 %581  ;;  %v518_v13 = vpop.permute.xlu0 %517 }
 0x185   : > { %v673_v14 = vsel %vm361_vm3, %v430_v58, %v518_v13  ;;  %v756_v15 = vsel %vm749_vm9, %v738_v10, %v518_v13  ;;  %v809_v16 = vsel %vm803_vm12, %v791_v11, %v518_v13 }
 0x186   : > { %v714_v17 = vsel %vm698_vm7, %v673_v14, %v582_v12  ;;  %v774_v60 = vsel %vm767_vm10, %v756_v15, %v582_v12  ;;  %v827_v63 = vsel %vm821_vm13, %v809_v16, %v582_v12 }
 0x187   : > { %v739_v1 = vsel %vm731_vm8, %v714_v17, %v3803_v3  ;;  %3065 = vmatmul.mubr.msk.bf16.gmra.mrb[8].mxu0 %vm853_vm14, %v827_v63  ;;  %v792_v18 = vsel %vm785_vm11, %v774_v60, %v3803_v3 }
 0x188   : > { %v444_v19 = vpop.permute.xlu1 %443  ;;  %v602_v21 = vpop.permute.xlu0 %601  ;;  %v810_v22 = vsel %vm803_vm12, %v792_v18, %v3795_v62  ;;  %v757_v23 = vsel %vm749_vm9, %v739_v1, %v3795_v62 }
 0x189   : > { %v828_v24 = vsel %vm821_vm13, %v810_v22, %v3805_v5  ;;  %v775_v25 = vsel %vm767_vm10, %v757_v23, %v3805_v5  ;;  %v740_v30 = vsel %vm731_vm8, %v716_v29, %v444_v19  ;;  %v724_v10 = vsel %vm698_vm7, %v688_v9, %v602_v21 }
 0x18a   : > { %3068 = vmatprep.mubr.msk.bf16.mxu0 %vm853_vm14, %v828_v24  ;;  %v793_v31 = vsel %vm785_vm11, %v775_v25, %v444_v19 }
 0x18c   : > { %v3898_v26 = vpop.permute.xlu1 %545  ;;  %v526_v27 = vpop.permute.xlu0 %525 }
 0x18d   : > { %v679_v32 = vsel %vm361_vm3, %v444_v19, %v526_v27  ;;  %v758_v33 = vsel %vm749_vm9, %v740_v30, %v526_v27  ;;  %v811_v34 = vsel %vm803_vm12, %v793_v31, %v526_v27 }
 0x190   : > { %v590_v35 = vpop.permute.xlu1 %589  ;;  %v479_v36 = vpop.permute.xlu0 %478 }
 0x191   : > { %v718_v37 = vsel %vm698_vm7, %v679_v32, %v590_v35  ;;  %v776_v40 = vsel %vm767_vm10, %v758_v33, %v590_v35  ;;  %v829_v62 = vsel %vm821_vm13, %v811_v34, %v590_v35  ;;  %v694_v19 = vsel %vm361_vm3, %v479_v36, %v3898_v26 }
 0x192   : > { %v741_v3 = vsel %vm731_vm8, %v718_v37, %v3817_v20  ;;  %v794_v5 = vsel %vm785_vm11, %v776_v40, %v3817_v20  ;;  %3069 = vmatmul.mubr.msk.bf16.gmra.mrb[12].mxu0 %vm853_vm14, %v829_v62 }
 0x193   : > { %v759_v42 = vsel %vm749_vm9, %v741_v3, %v3799_v0  ;;  %v812_v43 = vsel %vm803_vm12, %v794_v5, %v3799_v0 }
 0x194   : > { %v458_v45 = vpop.permute.xlu1 %457  ;;  %v777_v46 = vsel %vm767_vm10, %v759_v42, %v3838_v39  ;;  %v534_v47 = vpop.permute.xlu0 %533  ;;  %v830_v48 = vsel %vm821_vm13, %v812_v43, %v3838_v39 }
 0x195   : > { %v742_v49 = vsel %vm731_vm8, %v720_v44, %v458_v45  ;;  %v795_v20 = vsel %vm785_vm11, %v777_v46, %v458_v45  ;;  %3072 = vmatprep.mubr.msk.bf16.mxu0 %vm853_vm14, %v830_v48  ;;  %v685_v50 = vsel %vm361_vm3, %v458_v45, %v534_v47 }
 0x196   : > { %v760_v0 = vsel %vm749_vm9, %v742_v49, %v534_v47  ;;  %v813_v51 = vsel %vm803_vm12, %v795_v20, %v534_v47  ;;  %v3582_v49 = vmov 0.0   ;;  %v3310_v20 = vld [vmem:[#allocation6] sm:$0xff]  }
 0x197   : > { %3088 = vmatprep.subr.bf16.mxu1 %v3582_v49  ;;  %3148 = vmatprep.subr.bf16.mxu0 %v3582_v49 }
 0x198   : > { %v598_v52 = vpop.permute.xlu1 %597  ;;  %v610_v53 = vpop.permute.xlu0 %609  ;;  %3089 = vmatpush3.bf16.msra.mxu1 %v3310_v20  ;;  %3096 = vmatprep.mubr.msk.bf16.mxu1 %vm3583_vm15, %v3582_v49 }
 0x199   : > { %v722_v54 = vsel %vm698_vm7, %v685_v50, %v598_v52  ;;  %v778_v55 = vsel %vm767_vm10, %v760_v0, %v598_v52  ;;  %v831_v39 = vsel %vm821_vm13, %v813_v51, %v598_v52  ;;  %v728_v24 = vsel %vm698_vm7, %v694_v19, %v610_v53  ;;  %3090 = vmatprep.subr.bf16.mxu1 %v3582_v49  ;;  %v3311_v50 = vld [vmem:[#allocation6 + $0x8] sm:$0xff]   ;;  %v3312_v0 = vld [vmem:[#allocation6 + $0x10] sm:$0xff]   ;;  %v3313_v51 = vld [vmem:[#allocation6 + $0x18] sm:$0xff]  }
 0x19a   : > { %v743_v56 = vsel %vm731_vm8, %v722_v54, %v3862_v61  ;;  %v796_v57 = vsel %vm785_vm11, %v778_v55, %v3862_v61  ;;  %3073 = vmatmul.mubr.msk.bf16.gmra.mrb[16].mxu0 %vm853_vm14, %v831_v39  ;;  %v4010_v52 = vld [vmem:[%s4365_s4] sm:$0xff]  }
 0x19b   : > { %v761_v58 = vsel %vm749_vm9, %v743_v56, %v3836_v38  ;;  %v814_v59 = vsel %vm803_vm12, %v796_v57, %v3836_v38  ;;  %3149 = vmatpush3.bf16.msra.mxu0 %v4010_v52  ;;  %v4024_v54 = vld [vmem:[%s4363_s2] ss:$0 sm:$0xff] }
 0x19c   : > { %v472_v2 = vpop.permute.xlu1 %471  ;;  %v542_v4 = vpop.permute.xlu0 %541  ;;  %v832_v6 = vsel %vm821_vm13, %v814_v59, %v602_v21  ;;  %v779_v7 = vsel %vm767_vm10, %v761_v58, %v602_v21  ;;  %3091 = vmatpush3.bf16.msra.mxu1 %v3311_v50  ;;  %3150 = vmatprep.subr.bf16.mxu0 %v3582_v49 }
 0x19d   : > { %3076 = vmatprep.mubr.msk.bf16.mxu0 %vm853_vm14, %v832_v6  ;;  %v744_v12 = vsel %vm731_vm8, %v724_v10, %v472_v2  ;;  %v797_v13 = vsel %vm785_vm11, %v779_v7, %v472_v2  ;;  %v691_v15 = vsel %vm361_vm3, %v472_v2, %v542_v4  ;;  %3092 = vmatprep.subr.bf16.mxu1 %v3582_v49 }
 0x19e   : > { %v762_v16 = vsel %vm749_vm9, %v744_v12, %v542_v4  ;;  %v815_v17 = vsel %vm803_vm12, %v797_v13, %v542_v4 }
 0x1a0   : > { %v627_v11 = vpop.permute.xlu1 %626  ;;  %v623_v14 = vpop.permute.xlu0 %622  ;;  %3093 = vmatpush3.bf16.msra.mxu1 %v3312_v0 }
 0x1a1   : > { %3094 = vmatprep.subr.bf16.mxu1 %v3582_v49 }
 0x1a4   : > { %v606_v60 = vpop.permute.xlu1 %605  ;;  %v550_v21 = vpop.permute.xlu0 %549  ;;  %3095 = vmatpush3.bf16.msra.mxu1 %v3313_v51 }
 0x1a5   : > { %v726_v63 = vsel %vm698_vm7, %v691_v15, %v606_v60  ;;  %v780_v1 = vsel %vm767_vm10, %v762_v16, %v606_v60  ;;  %v833_v38 = vsel %vm821_vm13, %v815_v17, %v606_v60  ;;  %3100 = vmatprep.subr.bf16.mxu1 %v3582_v49 }
 0x1a6   : > { %v745_v61 = vsel %vm731_vm8, %v726_v63, %v479_v36  ;;  %v798_v18 = vsel %vm785_vm11, %v780_v1, %v479_v36  ;;  %3077 = vmatmul.mubr.msk.bf16.gmra.mrb[20].mxu0 %vm853_vm14, %v833_v38 }
 0x1a7   : > { %v763_v22 = vsel %vm749_vm9, %v745_v61, %v3898_v26  ;;  %v816_v23 = vsel %vm803_vm12, %v798_v18, %v3898_v26 }
 0x1a8   : > { %v486_v25 = vpop.permute.xlu1 %485  ;;  %v781_v27 = vsel %vm767_vm10, %v763_v22, %v610_v53  ;;  %v834_v28 = vsel %vm821_vm13, %v816_v23, %v610_v53  ;;  %v631_v34 = vpop.permute.xlu0 %630  ;;  %v4017_v53 = vld [vmem:[%s4365_s4 + $0x8] sm:$0xff]  }
 0x1a9   : > { %v746_v29 = vsel %vm731_vm8, %v728_v24, %v486_v25  ;;  %v799_v30 = vsel %vm785_vm11, %v781_v27, %v486_v25  ;;  %3080 = vmatprep.mubr.msk.bf16.mxu0 %vm853_vm14, %v834_v28  ;;  %v697_v31 = vsel %vm361_vm3, %v486_v25, %v550_v21  ;;  %3151 = vmatpush3.bf16.msra.mxu0 %v4017_v53  ;;  %vm1310_vm3 = vcmask 1043459  }
 0x1aa   : > { %v764_v33 = vsel %vm749_vm9, %v746_v29, %v550_v21  ;;  %v817_v26 = vsel %vm803_vm12, %v799_v30, %v550_v21  ;;  %3164 = vmatprep.subr.bf16.mxu0 %v3582_v49 }
 0x1ac   : > { %v614_v32 = vpop.permute.xlu1 %613  ;;  %v645_v45 = vpop.permute.xlu0 %644 }
 0x1ad   : > { %v730_v35 = vsel %vm698_vm7, %v697_v31, %v614_v32  ;;  %v782_v36 = vsel %vm767_vm10, %v764_v33, %v614_v32  ;;  %v835_v37 = vsel %vm821_vm13, %v817_v26, %v614_v32  ;;  %vm1322_vm7 = vcmask 1047559  }
 0x1ae   : > { %v748_v40 = vsel %vm731_vm8, %v730_v35, %v623_v14  ;;  %v800_v62 = vsel %vm785_vm11, %v782_v36, %v623_v14  ;;  %3081 = vmatmul.mubr.msk.bf16.gmra.mrb[24].mxu0 %vm853_vm14, %v835_v37  ;;  %vm1573_vm8 = vcmask 261120  }
 0x1af   : > { %v766_v3 = vsel %vm749_vm9, %v748_v40, %v627_v11  ;;  %v818_v5 = vsel %vm803_vm12, %v800_v62, %v627_v11  ;;  %vm2815_vm9 = vcmask 57344  }
 0x1b0   : > { %v641_v41 = vpop.permute.xlu1 %640  ;;  %v784_v42 = vsel %vm767_vm10, %v766_v3, %v631_v34  ;;  %v836_v43 = vsel %vm821_vm13, %v818_v5, %v631_v34 }
 0x1b1   : > { %v802_v44 = vsel %vm785_vm11, %v784_v42, %v641_v41  ;;  %3084 = vmatprep.mubr.msk.bf16.mxu0 %vm853_vm14, %v836_v43 }
 0x1b2   : > { %v820_v47 = vsel %vm803_vm12, %v802_v44, %v645_v45 }
 0x1b4   : > { %v649_v46 = vpop.permute.xlu1 %648 }
 0x1b5   : > { %v838_v48 = vsel %vm821_vm13, %v820_v47, %v649_v46 }
 0x1b6   : > { %3085 = vmatmul.mubr.msk.bf16.gmra.mrb[28].mxu0 %vm853_vm14, %v838_v48 }
 0x1b7   : > { %3152 = vmatprep.mubr.msk.bf16.mxu0 %vm3583_vm15, %v3582_v49 }
 0x24a   : > { %v3058_v55 = vpop.f32.mrb[0].mxu0 }
 0x24b   : > { %v936_v39 = vadd.f32 %v3058_v55, %v4024_v54  ;;  %v927_v56 = vpop.f32.mrb[1].mxu0 }
 0x24c   : > { %v928_v57 = vadd.f32 %v4024_v54, %v927_v56  ;;  %v3059_v58 = vpop.f32.mrb[2].mxu0 }
 0x24d   : > { %v1056_v59 = vmax.f32 %v936_v39, 0.0  ;;  %v939_v2 = vadd.f32 %v3059_v58, %v4024_v54  ;;  %v930_v4 = vpop.f32.mrb[3].mxu0 }
 0x24e   : > { %v1054_v6 = vmax.f32 %v928_v57, 0.0  ;;  %v931_v7 = vadd.f32 %v4024_v54, %v930_v4 }
 0x24f   : > { %v1088_v9 = vsel %vm1086_vm0, %v1056_v59, 0.0  ;;  %v1057_v10 = vmax.f32 %v939_v2, 0.0 }
 0x250   : > { %v1087_v11 = vsel %vm1086_vm0, %v1054_v6, 0.0  ;;  %v1055_v12 = vmax.f32 %v931_v7, 0.0 }
 0x251   : > { %v1089_v13 = vadd.f32 %v1088_v9, %v1087_v11  ;;  %v1119_v14 = vsel %vm1086_vm0, %v1057_v10, 0.0 }
 0x252   : > { %v1118_v15 = vsel %vm1086_vm0, %v1055_v12, 0.0  ;;  %v3062_v16 = vpop.f32.mrb[4].mxu0 }
 0x253   : > { %v1120_v17 = vadd.f32 %v1119_v14, %v1118_v15  ;;  %v952_v60 = vadd.f32 %v3062_v16, %v4024_v54  ;;  %v943_v63 = vpop.f32.mrb[5].mxu0 }
 0x254   : > { %v944_v1 = vadd.f32 %v4024_v54, %v943_v63  ;;  %v3063_v38 = vpop.f32.mrb[6].mxu0 }
 0x255   : > { %v955_v61 = vadd.f32 %v3063_v38, %v4024_v54  ;;  %v946_v18 = vpop.f32.mrb[7].mxu0  ;;  %v1060_v19 = vmax.f32 %v952_v60, 0.0 }
 0x256   : > { %v1058_v21 = vmax.f32 %v944_v1, 0.0  ;;  %v947_v22 = vadd.f32 %v4024_v54, %v946_v18 }
 0x257   : > { %v1061_v24 = vmax.f32 %v955_v61, 0.0  ;;  %v1092_v28 = vsel %vm1086_vm0, %v1060_v19, 0.0 }
 0x258   : > { %v1090_v23 = vsel %vm1086_vm0, %v1058_v21, 0.0  ;;  %v1059_v25 = vmax.f32 %v947_v22, 0.0 }
 0x259   : > { %v1091_v27 = vadd.f32 %v1090_v23, %v1089_v13  ;;  %v1123_v34 = vsel %vm1086_vm0, %v1061_v24, 0.0 }
 0x25a   : > { %v1121_v29 = vsel %vm1086_vm0, %v1059_v25, 0.0  ;;  %v3066_v30 = vpop.f32.mrb[8].mxu0 }
 0x25b   : > { %v1122_v31 = vadd.f32 %v1121_v29, %v1120_v17  ;;  %v968_v32 = vadd.f32 %v3066_v30, %v4024_v54  ;;  %v959_v33 = vpop.f32.mrb[9].mxu0  ;;  %v1093_v26 = vadd.f32 %v1092_v28, %v1091_v27 }
 0x25c   : > { %v960_v35 = vadd.f32 %v4024_v54, %v959_v33  ;;  %v3067_v36 = vpop.f32.mrb[10].mxu0 }
 0x25d   : > { %v971_v37 = vadd.f32 %v3067_v36, %v4024_v54  ;;  %v962_v40 = vpop.f32.mrb[11].mxu0  ;;  %v1124_v62 = vadd.f32 %v1123_v34, %v1122_v31  ;;  %v1064_v3 = vmax.f32 %v968_v32, 0.0 }
 0x25e   : > { %v1062_v5 = vmax.f32 %v960_v35, 0.0  ;;  %v963_v41 = vadd.f32 %v4024_v54, %v962_v40 }
 0x25f   : > { %v1065_v43 = vmax.f32 %v971_v37, 0.0  ;;  %v1096_v46 = vsel %vm1086_vm0, %v1064_v3, 0.0 }
 0x260   : > { %v1094_v42 = vsel %vm1086_vm0, %v1062_v5, 0.0  ;;  %v1063_v44 = vmax.f32 %v963_v41, 0.0 }
 0x261   : > { %v1095_v45 = vadd.f32 %v1094_v42, %v1093_v26  ;;  %v1127_v50 = vsel %vm1086_vm0, %v1065_v43, 0.0 }
 0x262   : > { %v1125_v47 = vsel %vm1086_vm0, %v1063_v44, 0.0 }
 0x263   : > { %v1126_v48 = vadd.f32 %v1125_v47, %v1124_v62  ;;  %v1097_v20 = vadd.f32 %v1096_v46, %v1095_v45 }
 0x265   : > { %v3070_v0 = vpop.f32.mrb[12].mxu0  ;;  %v1128_v51 = vadd.f32 %v1127_v50, %v1126_v48 }
 0x266   : > { %v984_v55 = vadd.f32 %v3070_v0, %v4024_v54  ;;  %v975_v39 = vpop.f32.mrb[13].mxu0 }
 0x267   : > { %v976_v56 = vadd.f32 %v4024_v54, %v975_v39  ;;  %v3071_v57 = vpop.f32.mrb[14].mxu0 }
 0x268   : > { %v987_v58 = vadd.f32 %v3071_v57, %v4024_v54  ;;  %v978_v59 = vpop.f32.mrb[15].mxu0  ;;  %v1068_v2 = vmax.f32 %v984_v55, 0.0 }
 0x269   : > { %v1066_v4 = vmax.f32 %v976_v56, 0.0  ;;  %v979_v6 = vadd.f32 %v4024_v54, %v978_v59 }
 0x26a   : > { %v1069_v9 = vmax.f32 %v987_v58, 0.0  ;;  %v1100_v12 = vsel %vm1086_vm0, %v1068_v2, 0.0 }
 0x26b   : > { %v1098_v7 = vsel %vm1086_vm0, %v1066_v4, 0.0  ;;  %v1067_v10 = vmax.f32 %v979_v6, 0.0 }
 0x26c   : > { %v1099_v11 = vadd.f32 %v1098_v7, %v1097_v20  ;;  %v1131_v63 = vsel %vm1086_vm0, %v1069_v9, 0.0 }
 0x26d   : > { %v1129_v13 = vsel %vm1086_vm0, %v1067_v10, 0.0  ;;  %v3074_v14 = vpop.f32.mrb[16].mxu0 }
 0x26e   : > { %v1130_v15 = vadd.f32 %v1129_v13, %v1128_v51  ;;  %v1000_v16 = vadd.f32 %v3074_v14, %v4024_v54  ;;  %v991_v17 = vpop.f32.mrb[17].mxu0  ;;  %v1101_v60 = vadd.f32 %v1100_v12, %v1099_v11  ;;  %v3584_v13 = vmov 1983009808  }
 0x26f   : > { %v992_v1 = vadd.f32 %v4024_v54, %v991_v17  ;;  %v3075_v38 = vpop.f32.mrb[18].mxu0  ;;  %v1151_v14 = vunpack.c.l.s4 %v3584_v13 }
 0x270   : > { %v1003_v61 = vadd.f32 %v3075_v38, %v4024_v54  ;;  %v994_v18 = vpop.f32.mrb[19].mxu0  ;;  %v1132_v19 = vadd.f32 %v1131_v63, %v1130_v15  ;;  %v1072_v21 = vmax.f32 %v1000_v16, 0.0 }
 0x271   : > { %v1070_v22 = vmax.f32 %v992_v1, 0.0  ;;  %v995_v23 = vadd.f32 %v4024_v54, %v994_v18 }
 0x272   : > { %v1073_v25 = vmax.f32 %v1003_v61, 0.0  ;;  %v1104_v29 = vsel %vm1086_vm0, %v1072_v21, 0.0  ;;  %v3585_v61 = vmov 1934713408  }
 0x273   : > { %v1102_v24 = vsel %vm1086_vm0, %v1070_v22, 0.0  ;;  %v1071_v27 = vmax.f32 %v995_v23, 0.0  ;;  %v1166_v18 = vunpack.c.l.s4 %v3585_v61  ;;  %v1152_v23 = vunpack.c.0.s8 %v1151_v14 }
 0x274   : > { %v1103_v28 = vadd.f32 %v1102_v24, %v1101_v60  ;;  %v1135_v33 = vsel %vm1086_vm0, %v1073_v25, 0.0 }
 0x275   : > { %v1133_v30 = vsel %vm1086_vm0, %v1071_v27, 0.0 }
 0x276   : > { %v1134_v31 = vadd.f32 %v1133_v30, %v1132_v19  ;;  %v1105_v32 = vadd.f32 %v1104_v29, %v1103_v28 }
 0x278   : > { %v1136_v26 = vadd.f32 %v1135_v33, %v1134_v31  ;;  %v1167_v31 = vunpack.c.0.s8 %v1166_v18 }
 0x279   : > { %v3078_v34 = vpop.f32.mrb[20].mxu0 }
 0x27a   : > { %v1016_v35 = vadd.f32 %v3078_v34, %v4024_v54  ;;  %v1007_v36 = vpop.f32.mrb[21].mxu0 }
 0x27b   : > { %v1008_v37 = vadd.f32 %v4024_v54, %v1007_v36  ;;  %v3079_v40 = vpop.f32.mrb[22].mxu0 }
 0x27c   : > { %v1019_v62 = vadd.f32 %v3079_v40, %v4024_v54  ;;  %v1010_v3 = vpop.f32.mrb[23].mxu0  ;;  %v1076_v5 = vmax.f32 %v1016_v35, 0.0  ;;  %v1155_v35 = vsub.s32 %v1152_v23, %v3761_v8 }
 0x27d   : > { %v1074_v41 = vmax.f32 %v1008_v37, 0.0  ;;  %v1011_v42 = vadd.f32 %v4024_v54, %v1010_v3 }
 0x27e   : > { %v1077_v44 = vmax.f32 %v1019_v62, 0.0  ;;  %v1108_v47 = vsel %vm1086_vm0, %v1076_v5, 0.0  ;;  %v1170_v62 = vsub.s32 %v1167_v31, %v3761_v8 }
 0x27f   : > { %v1106_v43 = vsel %vm1086_vm0, %v1074_v41, 0.0  ;;  %v1075_v45 = vmax.f32 %v1011_v42, 0.0 }
 0x280   : > { %v1107_v46 = vadd.f32 %v1106_v43, %v1105_v32  ;;  %v1139_v39 = vsel %vm1086_vm0, %v1077_v44, 0.0 }
 0x281   : > { %v1137_v48 = vsel %vm1086_vm0, %v1075_v45, 0.0  ;;  %v3082_v20 = vpop.f32.mrb[24].mxu0 }
 0x282   : > { %v1138_v50 = vadd.f32 %v1137_v48, %v1136_v26  ;;  %v1032_v0 = vadd.f32 %v3082_v20, %v4024_v54  ;;  %v1023_v51 = vpop.f32.mrb[25].mxu0  ;;  %v1109_v55 = vadd.f32 %v1108_v47, %v1107_v46 }
 0x283   : > { %v1024_v56 = vadd.f32 %v4024_v54, %v1023_v51  ;;  %v3083_v57 = vpop.f32.mrb[26].mxu0 }
 0x284   : > { %v1035_v58 = vadd.f32 %v3083_v57, %v4024_v54  ;;  %v1026_v59 = vpop.f32.mrb[27].mxu0  ;;  %v1140_v2 = vadd.f32 %v1139_v39, %v1138_v50  ;;  %v1080_v4 = vmax.f32 %v1032_v0, 0.0 }
 0x285   : > { %v1078_v6 = vmax.f32 %v1024_v56, 0.0  ;;  %v1027_v7 = vadd.f32 %v4024_v54, %v1026_v59 }
 0x286   : > { %v1081_v10 = vmax.f32 %v1035_v58, 0.0  ;;  %v1112_v15 = vsel %vm1086_vm0, %v1080_v4, 0.0 }
 0x287   : > { %v1110_v9 = vsel %vm1086_vm0, %v1078_v6, 0.0  ;;  %v1079_v11 = vmax.f32 %v1027_v7, 0.0 }
 0x288   : > { %v1111_v12 = vadd.f32 %v1110_v9, %v1109_v55  ;;  %v1143_v19 = vsel %vm1086_vm0, %v1081_v10, 0.0 }
 0x289   : > { %v1141_v16 = vsel %vm1086_vm0, %v1079_v11, 0.0  ;;  %v3086_v17 = vpop.f32.mrb[28].mxu0 }
 0x28a   : > { %v1142_v60 = vadd.f32 %v1141_v16, %v1140_v2  ;;  %v1048_v63 = vadd.f32 %v3086_v17, %v4024_v54  ;;  %v1039_v1 = vpop.f32.mrb[29].mxu0  ;;  %v1113_v38 = vadd.f32 %v1112_v15, %v1111_v12 }
 0x28b   : > { %v1040_v21 = vadd.f32 %v4024_v54, %v1039_v1  ;;  %v3087_v22 = vpop.f32.mrb[30].mxu0 }
 0x28c   : > { %v1051_v24 = vadd.f32 %v3087_v22, %v4024_v54  ;;  %v1042_v25 = vpop.f32.mrb[31].mxu0  ;;  %v1144_v27 = vadd.f32 %v1143_v19, %v1142_v60  ;;  %v1084_v28 = vmax.f32 %v1048_v63, 0.0 }
 0x28d   : > { %v1082_v29 = vmax.f32 %v1040_v21, 0.0  ;;  %v1043_v30 = vadd.f32 %v4024_v54, %v1042_v25 }
 0x28e   : > { %v1085_v33 = vmax.f32 %v1051_v24, 0.0  ;;  %v1116_v36 = vsel %vm1086_vm0, %v1084_v28, 0.0 }
 0x28f   : > { %v1114_v32 = vsel %vm1086_vm0, %v1082_v29, 0.0  ;;  %v1083_v26 = vmax.f32 %v1043_v30, 0.0 }
 0x290   : > { %v1115_v34 = vadd.f32 %v1114_v32, %v1113_v38  ;;  %v1147_v5 = vsel %vm1086_vm0, %v1085_v33, 0.0 }
 0x291   : > { %v1145_v37 = vsel %vm1086_vm0, %v1083_v26, 0.0 }
 0x292   : > { %v1117_v40 = vadd.f32 %v1116_v36, %v1115_v34  ;;  %v1146_v3 = vadd.f32 %v1145_v37, %v1144_v27 }
 0x294   : > { %v1149_v54 = vcombine.high %v1117_v40, %v3582_v49  ;;  %v1156_v41 = vrot.slane %v1117_v40, %v1155_v35  ;;  %v1148_v42 = vadd.f32 %v1147_v5, %v1146_v3 }
 0x296   : > { %v1163_v43 = vrot.slane %v1149_v54, %v1155_v35  ;;  %v1164_v44 = vcombine.high %v1156_v41, %v3582_v49  ;;  %v1171_v45 = vrot.slane %v1156_v41, %v1170_v62  ;;  %v1198_v46 = vcombine.high %v1148_v42, %v3582_v49 }
 0x297   : > { %v1205_v47 = vrot.slane %v1148_v42, %v1155_v35 }
 0x298   : > { %v1178_v48 = vrot.slane %v1164_v44, %v1170_v62  ;;  %v1179_v20 = vcombine.high %v1163_v43, %v3582_v49  ;;  %v1186_v50 = vrot.slane %v1163_v43, %v1170_v62  ;;  %v1194_v0 = vcombine.high %v1171_v45, %v3582_v49 }
 0x299   : > { %v1247_v51 = vpack.c.bf16 %v1171_v45, %v1171_v45  ;;  %v1212_v55 = vrot.slane %v1198_v46, %v1155_v35  ;;  %v1213_v39 = vcombine.high %v1205_v47, %v3582_v49  ;;  %v1220_v56 = vrot.slane %v1205_v47, %v1170_v62 }
 0x29a   : > { %v1193_v57 = vrot.slane %v1179_v20, %v1170_v62  ;;  %v1195_v58 = vcombine.high %v1178_v48, %v3582_v49  ;;  %v1196_v59 = vcombine.high %v1186_v50, %v3582_v49  ;;  %v1248_v2 = vpack.c.bf16 %v1194_v0, %v1194_v0 }
 0x29b   : > { %v1249_v4 = vpack.c.bf16 %v1178_v48, %v1178_v48  ;;  %v1251_v6 = vpack.c.bf16 %v1186_v50, %v1186_v50  ;;  %v1227_v7 = vrot.slane %v1213_v39, %v1170_v62  ;;  %v1287_v11 = vunpack.c.l.b16 %v1247_v51 }
 0x29c   : > { %v1250_v9 = vpack.c.bf16 %v1195_v58, %v1195_v58  ;;  %v1252_v10 = vpack.c.bf16 %v1196_v59, %v1196_v59  ;;  %v1288_v12 = vunpack.c.l.b16 %v1248_v2  ;;  %v1228_v15 = vcombine.high %v1212_v55, %v3582_v49 }
 0x29d   : > { %v1289_v13 = vunpack.c.l.b16 %v1249_v4  ;;  %v1291_v14 = vunpack.c.l.b16 %v1251_v6  ;;  %v1235_v16 = vrot.slane %v1212_v55, %v1170_v62  ;;  %v1253_v17 = vpack.c.bf16 %v1193_v57, %v1193_v57 }
 0x29e   : > { %v1290_v60 = vunpack.c.l.b16 %v1250_v9  ;;  %v1303_v63 = vrot.slane %v1288_v12, 7  ;;  %v1243_v1 = vcombine.high %v1220_v56, %v3582_v49  ;;  %v1292_v38 = vunpack.c.l.b16 %v1252_v10 }
 0x29f   : > { %v1306_v61 = vrot.slane %v1289_v13, 6  ;;  %v1242_v18 = vrot.slane %v1228_v15, %v1170_v62  ;;  %v1244_v19 = vcombine.high %v1227_v7, %v3582_v49  ;;  %v1312_v23 = vrot.slane %v1291_v14, 4 }
 0x2a0   : > { %v1305_v21 = vsel %vm1304_vm1, %v1303_v63, %v1287_v11  ;;  %v1309_v22 = vrot.slane %v1290_v60, 5  ;;  %v1245_v24 = vcombine.high %v1235_v16, %v3582_v49  ;;  %v1255_v27 = vpack.c.bf16 %v1220_v56, %v1220_v56 }
 0x2a1   : > { %v1308_v25 = vsel %vm1307_vm2, %v1306_v61, %v1305_v21  ;;  %v1256_v28 = vpack.c.bf16 %v1243_v1, %v1243_v1  ;;  %v1257_v29 = vpack.c.bf16 %v1227_v7, %v1227_v7  ;;  %v1258_v30 = vpack.c.bf16 %v1244_v19, %v1244_v19 }
 0x2a2   : > { %v1259_v31 = vpack.c.bf16 %v1235_v16, %v1235_v16  ;;  %v1260_v32 = vpack.c.bf16 %v1245_v24, %v1245_v24  ;;  %v1261_v33 = vpack.c.bf16 %v1242_v18, %v1242_v18  ;;  %v1295_v26 = vunpack.c.l.b16 %v1255_v27 }
 0x2a3   : > { %v1296_v34 = vunpack.c.l.b16 %v1256_v28  ;;  %v1297_v35 = vunpack.c.l.b16 %v1257_v29  ;;  %v1197_v36 = vcombine.high %v1193_v57, %v3582_v49  ;;  %v1298_v37 = vunpack.c.l.b16 %v1258_v30 }
 0x2a4   : > { %v1299_v40 = vunpack.c.l.b16 %v1259_v31  ;;  %v1300_v62 = vunpack.c.l.b16 %v1260_v32  ;;  %v1246_v3 = vcombine.high %v1242_v18, %v3582_v49  ;;  %v1293_v42 = vunpack.c.l.b16 %v1253_v17 }
 0x2a5   : > { %v1324_v5 = vrot.slane %v1296_v34, 7  ;;  %v1326_v54 = vrot.slane %v1297_v35, 6  ;;  %v1254_v41 = vpack.c.bf16 %v1197_v36, %v1197_v36  ;;  %v1315_v43 = vrot.slane %v1292_v38, 3 }
 0x2a6   : > { %v1328_v44 = vrot.slane %v1298_v37, 5  ;;  %v1330_v45 = vrot.slane %v1299_v40, 4  ;;  %v1262_v46 = vpack.c.bf16 %v1246_v3, %v1246_v3  ;;  %v1301_v20 = vunpack.c.l.b16 %v1261_v33 }
 0x2a7   : > { %v1325_v47 = vsel %vm1304_vm1, %v1324_v5, %v1295_v26  ;;  %v1294_v48 = vunpack.c.l.b16 %v1254_v41  ;;  %v1311_v50 = vsel %vm1310_vm3, %v1309_v22, %v1308_v25  ;;  %v1318_v39 = vrot.slane %v1293_v42, 2 }
 0x2a8   : > { %v1327_v0 = vsel %vm1307_vm2, %v1326_v54, %v1325_v47  ;;  %v1302_v51 = vunpack.c.l.b16 %v1262_v46  ;;  %v1314_v55 = vsel %vm1313_vm4, %v1312_v23, %v1311_v50  ;;  %v1332_v56 = vrot.slane %v1300_v62, 3  ;;  %v1523_v23 = vld [vmem:[%s4366_s5] sm:$0x1] }
 0x2a9   : > { %v1317_v57 = vsel %vm1316_vm5, %v1315_v43, %v1314_v55  ;;  %v1329_v58 = vsel %vm1310_vm3, %v1328_v44, %v1327_v0  ;;  %v1334_v4 = vrot.slane %v1301_v20, 2  ;;  %v1321_v6 = vrot.slane %v1294_v48, 1 }
 0x2aa   : > { %v1320_v59 = vsel %vm1319_vm6, %v1318_v39, %v1317_v57  ;;  %v1331_v2 = vsel %vm1313_vm4, %v1330_v45, %v1329_v58  ;;  %v1336_v9 = vrot.slane %v1302_v51, 1  ;;  %v3586_v14 = vmov 0  }
 0x2ab   : > { %v1333_v7 = vsel %vm1316_vm5, %v1332_v56, %v1331_v2  ;;  %v1323_v11 = vsel %vm1322_vm7, %v1321_v6, %v1320_v59  ;;  %v3587_v15 = vmov 1966171168  }
 0x2ac   : > { %v1335_v10 = vsel %vm1319_vm6, %v1334_v4, %v1333_v7  ;;  %v1411_v16 = vunpack.c.l.s4 %v3587_v15 }
 0x2ad   : > { %v1337_v12 = vsel %vm1322_vm7, %v1336_v9, %v1335_v10 }
 0x2ae   : > { %v1338_v13 = vpack.c.b16 %v1337_v12, %v1323_v11  ;;  %v1412_v17 = vunpack.c.0.s8 %v1411_v16 }
 0x2b0   : > { %3097 = vmatmul.mubr.msk.bf16.vlgmr.msra.gmra.mrb[0].mxu1 %vm1086_vm0, %v1338_v13  ;;  %v1415_v60 = vsub.s32 %v1412_v17, %v3761_v8 }
 0x2b1   : > { %3101 = vmatpush3.bf16.msra.mxu1 %v4010_v52  ;;  %3104 = vmatprep.mubr.msk.bf16.mxu1 %vm3583_vm15, %v3582_v49 }
 0x2b2   : > { %3102 = vmatprep.subr.bf16.mxu1 %v3582_v49 }
 0x2b5   : > { %3103 = vmatpush3.bf16.msra.mxu1 %v4017_v53 }
 0x2b6   : > { %3108 = vmatprep.subr.bf16.mxu1 %v3582_v49 }
 0x2b8   : > { %3105 = vmatmul.mubr.bf16.vlgmr.msra.gmra.mrb[4].mxu1 %v3586_v14 }
 0x2b9   : > { %3109 = vmatpush3.bf16.msra.mxu1 %v4010_v52  ;;  %3112 = vmatprep.mubr.msk.bf16.mxu1 %vm3583_vm15, %v3582_v49 }
 0x2ba   : > { %3110 = vmatprep.subr.bf16.mxu1 %v3582_v49 }
 0x2bd   : > { %3111 = vmatpush3.bf16.msra.mxu1 %v4017_v53 }
 0x2be   : > { %3116 = vmatprep.subr.bf16.mxu1 %v3582_v49 }
 0x383   : > { %v1400_v63 = vpop.f32.mrb[0].mxu1 }
 0x384   : > { %v1409_v1 = vcombine.high %v1400_v63, %v1400_v63  ;;  %v1416_v38 = vrot.slane %v1400_v63, %v1415_v60  ;;  %v3098_v61 = vpop.f32.mrb[1].mxu1 }
 0x385   : > { %v1403_v18 = vpop.f32.mrb[2].mxu1 }
 0x386   : > { %v1423_v19 = vrot.slane %v1409_v1, %v1415_v60  ;;  %v1424_v21 = vcombine.high %v1416_v38, %v1416_v38  ;;  %v1432_v22 = vrot.slane %v1416_v38, %v1415_v60  ;;  %v1458_v24 = vcombine.high %v1403_v18, %v1403_v18  ;;  %v3099_v25 = vpop.f32.mrb[3].mxu1 }
 0x387   : > { %v1465_v27 = vrot.slane %v1403_v18, %v1415_v60 }
 0x388   : > { %v1425_v28 = vcombine.high %v1423_v19, %v1423_v19  ;;  %v1439_v29 = vrot.slane %v1423_v19, %v1415_v60  ;;  %v1446_v30 = vrot.slane %v1424_v21, %v1415_v60  ;;  %v1454_v31 = vcombine.high %v1432_v22, %v1432_v22 }
 0x389   : > { %v1524_v8 = vadd.f32 %v1523_v23, %v1432_v22  ;;  %v1472_v32 = vrot.slane %v1458_v24, %v1415_v60  ;;  %v1473_v33 = vcombine.high %v1465_v27, %v1465_v27  ;;  %v1481_v26 = vrot.slane %v1465_v27, %v1415_v60 }
 0x38a   : > { %v1453_v34 = vrot.slane %v1425_v28, %v1415_v60  ;;  %v1455_v35 = vcombine.high %v1439_v29, %v1439_v29  ;;  %v1456_v36 = vcombine.high %v1446_v30, %v1446_v30  ;;  %v1525_v37 = vadd.f32 %v1523_v23, %v1446_v30 }
 0x38b   : > { %v1526_v40 = vadd.f32 %v1523_v23, %v1454_v31  ;;  %v1528_v62 = vadd.f32 %v1523_v23, %v1439_v29  ;;  %1540 = vst [vmem:[#allocation2] sm:$0x1] %v1524_v8  ;;  %v1474_v3 = vcombine.high %v1472_v32, %v1472_v32  ;;  %v1488_v5 = vrot.slane %v1472_v32, %v1415_v60  ;;  %v1610_v54 = vpop.f32.mrb[4].mxu1 }
 0x38c   : > { %v1457_v41 = vcombine.high %v1453_v34, %v1453_v34  ;;  %v1527_v42 = vadd.f32 %v1523_v23, %v1456_v36  ;;  %v1529_v43 = vadd.f32 %v1523_v23, %v1453_v34  ;;  %v1530_v44 = vadd.f32 %v1523_v23, %v1455_v35  ;;  %1541 = vst [vmem:[#allocation2 + $0x1] sm:$0x1] %v1525_v37  ;;  %v3106_v45 = vpop.f32.mrb[5].mxu1 }
 0x38d   : > { %1542 = vst [vmem:[#allocation2 + $0x2] sm:$0x1] %v1526_v40  ;;  %1544 = vst [vmem:[#allocation2 + $0x4] sm:$0x1] %v1528_v62  ;;  %v1495_v46 = vrot.slane %v1473_v33, %v1415_v60  ;;  %v1502_v47 = vrot.slane %v1474_v3, %v1415_v60  ;;  %v1503_v48 = vcombine.high %v1481_v26, %v1481_v26  ;;  %v1613_v50 = vpop.f32.mrb[6].mxu1 }
 0x38e   : > { %v1504_v20 = vcombine.high %v1488_v5, %v1488_v5  ;;  %v1531_v0 = vadd.f32 %v1523_v23, %v1457_v41  ;;  %1543 = vst [vmem:[#allocation2 + $0x3] sm:$0x1] %v1527_v42  ;;  %1545 = vst [vmem:[#allocation2 + $0x5] sm:$0x1] %v1529_v43  ;;  %v1532_v51 = vadd.f32 %v1523_v23, %v1481_v26  ;;  %v3107_v39 = vpop.f32.mrb[7].mxu1 }
 0x38f   : > { %1546 = vst [vmem:[#allocation2 + $0x6] sm:$0x1] %v1530_v44  ;;  %v1536_v55 = vadd.f32 %v1523_v23, %v1488_v5  ;;  %v1505_v56 = vcombine.high %v1495_v46, %v1495_v46  ;;  %v1506_v57 = vcombine.high %v1502_v47, %v1502_v47  ;;  %v1533_v58 = vadd.f32 %v1523_v23, %v1495_v46 }
 0x390   : > { %v1534_v59 = vadd.f32 %v1523_v23, %v1503_v48  ;;  %1547 = vst [vmem:[#allocation2 + $0x7] sm:$0x1] %v1531_v0  ;;  %v1537_v2 = vadd.f32 %v1523_v23, %v1502_v47  ;;  %v1538_v4 = vadd.f32 %v1523_v23, %v1504_v20  ;;  %1548 = vst [vmem:[#allocation2 + $0x8] sm:$0x1] %v1532_v51 }
 0x391   : > { %1552 = vst [vmem:[#allocation2 + $0xc] sm:$0x1] %v1536_v55  ;;  %v1535_v6 = vadd.f32 %v1523_v23, %v1505_v56  ;;  %v1539_v7 = vadd.f32 %v1523_v23, %v1506_v57  ;;  %1549 = vst [vmem:[#allocation2 + $0x9] sm:$0x1] %v1533_v58 }
 0x392   : > { %1550 = vst [vmem:[#allocation2 + $0xa] sm:$0x1] %v1534_v59  ;;  %1553 = vst [vmem:[#allocation2 + $0xd] sm:$0x1] %v1537_v2  ;;  %v1560_v9 = vld [vmem:[#allocation2] sm:$0x1] }
 0x393   : > { %1554 = vst [vmem:[#allocation2 + $0xe] sm:$0x1] %v1538_v4  ;;  %1551 = vst [vmem:[#allocation2 + $0xb] sm:$0x1] %v1535_v6  ;;  %v1616_v10 = vadd.f32 %v1610_v54, %v1560_v9  ;;  %v1642_v22 = vld [vmem:[#allocation2 + $0x1] sm:$0x1] }
 0x394   : > { %1555 = vst [vmem:[#allocation2 + $0xf] sm:$0x1] %v1539_v7  ;;  %v1716_v54 = vld [vmem:[#allocation2 + $0x2] sm:$0x1] }
 0x395   : > { %3318 = vtanh.f32 %v1616_v10  ;;  %v2943_v12 = vmul.f32 -1.442695, %v1616_v10  ;;  %v1790_v6 = vld [vmem:[#allocation2 + $0x3] sm:$0x1] }
 0x397   : > { %3320 = vpow2.f32 %v2943_v12 }
 0x39f   : > { %v3319_v11 = vpop.eup %3318 }
 0x3a0   : > { %1626 = vrot.lane.b32.xlu0 %v3319_v11, %s3588_s14 }
 0x3a1   : > { %v3321_v13 = vpop.eup %3320 }
 0x3a2   : > { %v1620_v14 = vadd.f32 1.0, %v3321_v13 }
 0x3a4   : > { %3322 = vrcp.f32 %v1620_v14 }
 0x3ae   : > { %v3323_v15 = vpop.eup %3322 }
 0x3af   : > { %v1624_v60 = vmul.f32 0.0, %v3323_v15 }
 0x412   : > { %v1627_v16 = vpop.permute.xlu0 %1626 }
 0x413   : > { %v1629_v17 = vmul.f32 %v3323_v15, %v1627_v16 }
 0x415   : > { %1631 = vrot.lane.b32.xlu1 %v1629_v17, %s3589_s20 }
 0x487   : > { %v1632_v63 = vpop.permute.xlu1 %1631 }
 0x488   : > { %v1634_v1 = vadd.f32 %v1632_v63, %v1624_v60 }
 0x48a   : > { %3324 = vtanh.f32 %v1634_v1 }
 0x494   : > { %v3325_v38 = vpop.eup %3324 }
 0x495   : > { %1637 = vrot.lane.b32.xlu0 %v3325_v38, %s3588_s14 }
 0x507   : > { %v1638_v61 = vpop.permute.xlu0 %1637 }
 0x508   : > { %v1640_v18 = vmul.f32 %v3323_v15, %v1638_v61 }
 0x50a   : > { %v1643_v19 = vpack.c.bf16 %v1640_v18, %v1640_v18 }
 0x50c   : > { %1645 = vrot.lane.b32.xlu1 %v1643_v19, %s3589_s20 }
 0x57e   : > { %v1646_v21 = vpop.permute.xlu1 %1645 }
 0x57f   : > { %3113 = vmatmul.mubr.msk.bf16.vlgmr.msra.gmra.mrb[8].mxu1 %vm1573_vm8, %v1646_v21 }
 0x580   : > { %3117 = vmatpush3.bf16.msra.mxu1 %v4010_v52  ;;  %3120 = vmatprep.mubr.msk.bf16.mxu1 %vm3583_vm15, %v3582_v49 }
 0x581   : > { %3118 = vmatprep.subr.bf16.mxu1 %v3582_v49 }
 0x584   : > { %3119 = vmatpush3.bf16.msra.mxu1 %v4017_v53 }
 0x585   : > { %3124 = vmatprep.subr.bf16.mxu1 %v3582_v49 }
 0x652   : > { %v1684_v23 = vpop.f32.mrb[8].mxu1 }
 0x653   : > { %v1690_v24 = vadd.f32 %v1684_v23, %v1642_v22  ;;  %v3114_v25 = vpop.f32.mrb[9].mxu1 }
 0x654   : > { %v1687_v27 = vpop.f32.mrb[10].mxu1 }
 0x655   : > { %3326 = vtanh.f32 %v1690_v24  ;;  %v3115_v28 = vpop.f32.mrb[11].mxu1  ;;  %v2945_v30 = vmul.f32 -1.442695, %v1690_v24  ;;  %v1864_v24 = vld [vmem:[#allocation2 + $0x4] sm:$0x1] }
 0x657   : > { %3328 = vpow2.f32 %v2945_v30 }
 0x65f   : > { %v3327_v29 = vpop.eup %3326 }
 0x660   : > { %1700 = vrot.lane.b32.xlu0 %v3327_v29, %s3588_s14 }
 0x661   : > { %v3329_v31 = vpop.eup %3328 }
 0x662   : > { %v1694_v8 = vadd.f32 1.0, %v3329_v31 }
 0x664   : > { %3330 = vrcp.f32 %v1694_v8 }
 0x66e   : > { %v3331_v32 = vpop.eup %3330 }
 0x66f   : > { %v1698_v34 = vmul.f32 %v3331_v32, %v1634_v1 }
 0x6d2   : > { %v1701_v33 = vpop.permute.xlu0 %1700 }
 0x6d3   : > { %v1703_v26 = vmul.f32 %v3331_v32, %v1701_v33 }
 0x6d5   : > { %1705 = vrot.lane.b32.xlu1 %v1703_v26, %s3589_s20 }
 0x747   : > { %v1706_v35 = vpop.permute.xlu1 %1705 }
 0x748   : > { %v1708_v36 = vadd.f32 %v1706_v35, %v1698_v34 }
 0x74a   : > { %3332 = vtanh.f32 %v1708_v36 }
 0x754   : > { %v3333_v37 = vpop.eup %3332 }
 0x755   : > { %1711 = vrot.lane.b32.xlu0 %v3333_v37, %s3588_s14 }
 0x7c7   : > { %v1712_v40 = vpop.permute.xlu0 %1711 }
 0x7c8   : > { %v1714_v62 = vmul.f32 %v3331_v32, %v1712_v40 }
 0x7ca   : > { %v1717_v3 = vpack.c.bf16 %v1714_v62, %v1714_v62 }
 0x7cc   : > { %1719 = vrot.lane.b32.xlu1 %v1717_v3, %s3589_s20 }
 0x83e   : > { %v1720_v5 = vpop.permute.xlu1 %1719 }
 0x83f   : > { %3121 = vmatmul.mubr.msk.bf16.vlgmr.msra.gmra.mrb[12].mxu1 %vm1573_vm8, %v1720_v5 }
 0x840   : > { %3125 = vmatpush3.bf16.msra.mxu1 %v4010_v52  ;;  %3128 = vmatprep.mubr.msk.bf16.mxu1 %vm3583_vm15, %v3582_v49 }
 0x841   : > { %3126 = vmatprep.subr.bf16.mxu1 %v3582_v49 }
 0x844   : > { %3127 = vmatpush3.bf16.msra.mxu1 %v4017_v53 }
 0x845   : > { %3132 = vmatprep.subr.bf16.mxu1 %v3582_v49 }
 0x912   : > { %v1758_v41 = vpop.f32.mrb[12].mxu1 }
 0x913   : > { %v1764_v42 = vadd.f32 %v1758_v41, %v1716_v54  ;;  %v3122_v43 = vpop.f32.mrb[13].mxu1  ;;  %v4187_v54 = vld [vmem:[%s4365_s4] sm:$0xff]   ;;  %v4196_v41 = vld [vmem:[%s4365_s4 + $0x8] sm:$0xff]  }
 0x914   : > { %v1761_v44 = vpop.f32.mrb[14].mxu1 }
 0x915   : > { %3334 = vtanh.f32 %v1764_v42  ;;  %v3123_v45 = vpop.f32.mrb[15].mxu1  ;;  %v2947_v47 = vmul.f32 -1.442695, %v1764_v42  ;;  %v1938_v42 = vld [vmem:[#allocation2 + $0x5] sm:$0x1] }
 0x917   : > { %3336 = vpow2.f32 %v2947_v47 }
 0x91f   : > { %v3335_v46 = vpop.eup %3334 }
 0x920   : > { %1774 = vrot.lane.b32.xlu0 %v3335_v46, %s3588_s14 }
 0x921   : > { %v3337_v48 = vpop.eup %3336 }
 0x922   : > { %v1768_v20 = vadd.f32 1.0, %v3337_v48 }
 0x924   : > { %3338 = vrcp.f32 %v1768_v20 }
 0x92e   : > { %v3339_v50 = vpop.eup %3338 }
 0x92f   : > { %v1772_v55 = vmul.f32 %v3339_v50, %v1708_v36 }
 0x992   : > { %v1775_v0 = vpop.permute.xlu0 %1774 }
 0x993   : > { %v1777_v51 = vmul.f32 %v3339_v50, %v1775_v0 }
 0x995   : > { %1779 = vrot.lane.b32.xlu1 %v1777_v51, %s3589_s20 }
 0xa07   : > { %v1780_v39 = vpop.permute.xlu1 %1779 }
 0xa08   : > { %v1782_v56 = vadd.f32 %v1780_v39, %v1772_v55 }
 0xa0a   : > { %3340 = vtanh.f32 %v1782_v56 }
 0xa14   : > { %v3341_v57 = vpop.eup %3340 }
 0xa15   : > { %1785 = vrot.lane.b32.xlu0 %v3341_v57, %s3588_s14 }
 0xa87   : > { %v1786_v58 = vpop.permute.xlu0 %1785 }
 0xa88   : > { %v1788_v59 = vmul.f32 %v3339_v50, %v1786_v58 }
 0xa8a   : > { %v1791_v2 = vpack.c.bf16 %v1788_v59, %v1788_v59 }
 0xa8c   : > { %1793 = vrot.lane.b32.xlu1 %v1791_v2, %s3589_s20 }
 0xafe   : > { %v1794_v4 = vpop.permute.xlu1 %1793 }
 0xaff   : > { %3129 = vmatmul.mubr.msk.bf16.vlgmr.msra.gmra.mrb[16].mxu1 %vm1573_vm8, %v1794_v4 }
 0xb00   : > { %3133 = vmatpush3.bf16.msra.mxu1 %v4010_v52  ;;  %3136 = vmatprep.mubr.msk.bf16.mxu1 %vm3583_vm15, %v3582_v49 }
 0xb01   : > { %3134 = vmatprep.subr.bf16.mxu1 %v3582_v49 }
 0xb04   : > { %3135 = vmatpush3.bf16.msra.mxu1 %v4017_v53 }
 0xb05   : > { %3140 = vmatprep.subr.bf16.mxu1 %v3582_v49 }
 0xbd2   : > { %v1832_v7 = vpop.f32.mrb[16].mxu1 }
 0xbd3   : > { %v1838_v9 = vadd.f32 %v1832_v7, %v1790_v6  ;;  %v3130_v10 = vpop.f32.mrb[17].mxu1 }
 0xbd4   : > { %v1835_v11 = vpop.f32.mrb[18].mxu1 }
 0xbd5   : > { %3342 = vtanh.f32 %v1838_v9  ;;  %v3131_v12 = vpop.f32.mrb[19].mxu1  ;;  %v2949_v14 = vmul.f32 -1.442695, %v1838_v9  ;;  %v2012_v9 = vld [vmem:[#allocation2 + $0x6] sm:$0x1] }
 0xbd7   : > { %3344 = vpow2.f32 %v2949_v14 }
 0xbdf   : > { %v3343_v13 = vpop.eup %3342 }
 0xbe0   : > { %1848 = vrot.lane.b32.xlu0 %v3343_v13, %s3588_s14 }
 0xbe1   : > { %v3345_v15 = vpop.eup %3344 }
 0xbe2   : > { %v1842_v16 = vadd.f32 1.0, %v3345_v15 }
 0xbe4   : > { %3346 = vrcp.f32 %v1842_v16 }
 0xbee   : > { %v3347_v17 = vpop.eup %3346 }
 0xbef   : > { %v1846_v1 = vmul.f32 %v3347_v17, %v1782_v56 }
 0xc52   : > { %v1849_v60 = vpop.permute.xlu0 %1848 }
 0xc53   : > { %v1851_v63 = vmul.f32 %v3347_v17, %v1849_v60 }
 0xc55   : > { %1853 = vrot.lane.b32.xlu1 %v1851_v63, %s3589_s20 }
 0xcc7   : > { %v1854_v38 = vpop.permute.xlu1 %1853 }
 0xcc8   : > { %v1856_v61 = vadd.f32 %v1854_v38, %v1846_v1 }
 0xcca   : > { %3348 = vtanh.f32 %v1856_v61 }
 0xcd4   : > { %v3349_v18 = vpop.eup %3348 }
 0xcd5   : > { %1859 = vrot.lane.b32.xlu0 %v3349_v18, %s3588_s14 }
 0xd47   : > { %v1860_v19 = vpop.permute.xlu0 %1859 }
 0xd48   : > { %v1862_v21 = vmul.f32 %v3347_v17, %v1860_v19 }
 0xd4a   : > { %v1865_v22 = vpack.c.bf16 %v1862_v21, %v1862_v21 }
 0xd4c   : > { %1867 = vrot.lane.b32.xlu1 %v1865_v22, %s3589_s20 }
 0xdbe   : > { %v1868_v23 = vpop.permute.xlu1 %1867 }
 0xdbf   : > { %3137 = vmatmul.mubr.msk.bf16.vlgmr.msra.gmra.mrb[20].mxu1 %vm1573_vm8, %v1868_v23 }
 0xdc0   : > { %3141 = vmatpush3.bf16.msra.mxu1 %v4010_v52  ;;  %3144 = vmatprep.mubr.msk.bf16.mxu1 %vm3583_vm15, %v3582_v49 }
 0xdc1   : > { %3142 = vmatprep.subr.bf16.mxu1 %v3582_v49 }
 0xdc4   : > { %3143 = vmatpush3.bf16.msra.mxu1 %v4017_v53 }
 0xdc5   : > { %3156 = vmatprep.subr.bf16.mxu1 %v3582_v49 }
 0xe92   : > { %v1906_v25 = vpop.f32.mrb[20].mxu1 }
 0xe93   : > { %v1912_v27 = vadd.f32 %v1906_v25, %v1864_v24  ;;  %v3138_v28 = vpop.f32.mrb[21].mxu1 }
 0xe94   : > { %v1909_v29 = vpop.f32.mrb[22].mxu1 }
 0xe95   : > { %3350 = vtanh.f32 %v1912_v27  ;;  %v3139_v30 = vpop.f32.mrb[23].mxu1  ;;  %v2951_v52 = vmul.f32 -1.442695, %v1912_v27  ;;  %v2086_v27 = vld [vmem:[#allocation2 + $0x7] sm:$0x1] }
 0xe97   : > { %3352 = vpow2.f32 %v2951_v52 }
 0xe9f   : > { %v3351_v31 = vpop.eup %3350 }
 0xea0   : > { %1922 = vrot.lane.b32.xlu0 %v3351_v31, %s3588_s14 }
 0xea1   : > { %v3353_v8 = vpop.eup %3352 }
 0xea2   : > { %v1916_v32 = vadd.f32 1.0, %v3353_v8 }
 0xea4   : > { %3354 = vrcp.f32 %v1916_v32 }
 0xeae   : > { %v3355_v33 = vpop.eup %3354 }
 0xeaf   : > { %v1920_v34 = vmul.f32 %v3355_v33, %v1856_v61 }
 0xf12   : > { %v1923_v26 = vpop.permute.xlu0 %1922 }
 0xf13   : > { %v1925_v53 = vmul.f32 %v3355_v33, %v1923_v26 }
 0xf15   : > { %1927 = vrot.lane.b32.xlu1 %v1925_v53, %s3589_s20 }
 0xf87   : > { %v1928_v35 = vpop.permute.xlu1 %1927 }
 0xf88   : > { %v1930_v36 = vadd.f32 %v1928_v35, %v1920_v34 }
 0xf8a   : > { %3356 = vtanh.f32 %v1930_v36 }
 0xf94   : > { %v3357_v37 = vpop.eup %3356 }
 0xf95   : > { %1933 = vrot.lane.b32.xlu0 %v3357_v37, %s3588_s14 }
0x1007   : > { %v1934_v40 = vpop.permute.xlu0 %1933 }
0x1008   : > { %v1936_v62 = vmul.f32 %v3355_v33, %v1934_v40 }
0x100a   : > { %v1939_v3 = vpack.c.bf16 %v1936_v62, %v1936_v62 }
0x100c   : > { %1941 = vrot.lane.b32.xlu1 %v1939_v3, %s3589_s20 }
0x107e   : > { %v1942_v5 = vpop.permute.xlu1 %1941 }
0x107f   : > { %3145 = vmatmul.mubr.msk.bf16.vlgmr.msra.gmra.mrb[24].mxu1 %vm1573_vm8, %v1942_v5 }
0x1080   : > { %3157 = vmatpush3.bf16.msra.mxu1 %v4187_v54  ;;  %3160 = vmatprep.mubr.msk.bf16.mxu1 %vm3583_vm15, %v3582_v49 }
0x1081   : > { %3158 = vmatprep.subr.bf16.mxu1 %v3582_v49 }
0x1084   : > { %3159 = vmatpush3.bf16.msra.mxu1 %v4196_v41 }
0x1085   : > { %3172 = vmatprep.subr.bf16.mxu1 %v3582_v49 }
0x1152   : > { %v1980_v43 = vpop.f32.mrb[24].mxu1 }
0x1153   : > { %v1986_v44 = vadd.f32 %v1980_v43, %v1938_v42  ;;  %v3146_v45 = vpop.f32.mrb[25].mxu1 }
0x1154   : > { %v1983_v46 = vpop.f32.mrb[26].mxu1 }
0x1155   : > { %3358 = vtanh.f32 %v1986_v44  ;;  %v3147_v47 = vpop.f32.mrb[27].mxu1  ;;  %v2953_v20 = vmul.f32 -1.442695, %v1986_v44  ;;  %v2160_v44 = vld [vmem:[#allocation2 + $0x8] sm:$0x1] }
0x1157   : > { %3360 = vpow2.f32 %v2953_v20 }
0x115f   : > { %v3359_v48 = vpop.eup %3358 }
0x1160   : > { %1996 = vrot.lane.b32.xlu0 %v3359_v48, %s3588_s14 }
0x1161   : > { %v3361_v50 = vpop.eup %3360 }
0x1162   : > { %v1990_v0 = vadd.f32 1.0, %v3361_v50 }
0x1164   : > { %3362 = vrcp.f32 %v1990_v0 }
0x116e   : > { %v3363_v51 = vpop.eup %3362 }
0x116f   : > { %v1994_v56 = vmul.f32 %v3363_v51, %v1930_v36 }
0x11d2   : > { %v1997_v55 = vpop.permute.xlu0 %1996 }
0x11d3   : > { %v1999_v39 = vmul.f32 %v3363_v51, %v1997_v55 }
0x11d5   : > { %2001 = vrot.lane.b32.xlu1 %v1999_v39, %s3589_s20 }
0x1247   : > { %v2002_v57 = vpop.permute.xlu1 %2001 }
0x1248   : > { %v2004_v58 = vadd.f32 %v2002_v57, %v1994_v56 }
0x124a   : > { %3364 = vtanh.f32 %v2004_v58 }
0x1254   : > { %v3365_v59 = vpop.eup %3364 }
0x1255   : > { %2007 = vrot.lane.b32.xlu0 %v3365_v59, %s3588_s14 }
0x12c7   : > { %v2008_v2 = vpop.permute.xlu0 %2007 }
0x12c8   : > { %v2010_v4 = vmul.f32 %v3363_v51, %v2008_v2 }
0x12ca   : > { %v2013_v6 = vpack.c.bf16 %v2010_v4, %v2010_v4 }
0x12cc   : > { %2015 = vrot.lane.b32.xlu1 %v2013_v6, %s3589_s20 }
0x133e   : > { %v2016_v7 = vpop.permute.xlu1 %2015 }
0x133f   : > { %3153 = vmatmul.mubr.msk.bf16.vlgmr.msra.gmra.mrb[32].mxu0 %vm1573_vm8, %v2016_v7 }
0x1340   : > { %3165 = vmatpush3.bf16.msra.mxu0 %v4187_v54  ;;  %3168 = vmatprep.mubr.msk.bf16.mxu0 %vm3583_vm15, %v3582_v49 }
0x1341   : > { %3166 = vmatprep.subr.bf16.mxu0 %v3582_v49 }
0x1344   : > { %3167 = vmatpush3.bf16.msra.mxu0 %v4196_v41 }
0x1345   : > { %3180 = vmatprep.subr.bf16.mxu0 %v3582_v49 }
0x1412   : > { %v2054_v10 = vpop.f32.mrb[32].mxu0 }
0x1413   : > { %v2060_v11 = vadd.f32 %v2054_v10, %v2012_v9  ;;  %v3154_v12 = vpop.f32.mrb[33].mxu0 }
0x1414   : > { %v2057_v13 = vpop.f32.mrb[34].mxu0 }
0x1415   : > { %3366 = vtanh.f32 %v2060_v11  ;;  %v3155_v14 = vpop.f32.mrb[35].mxu0  ;;  %v2955_v16 = vmul.f32 -1.442695, %v2060_v11  ;;  %v2234_v11 = vld [vmem:[#allocation2 + $0x9] sm:$0x1] }
0x1417   : > { %3368 = vpow2.f32 %v2955_v16 }
0x141f   : > { %v3367_v15 = vpop.eup %3366 }
0x1420   : > { %2070 = vrot.lane.b32.xlu0 %v3367_v15, %s3588_s14 }
0x1421   : > { %v3369_v17 = vpop.eup %3368 }
0x1422   : > { %v2064_v60 = vadd.f32 1.0, %v3369_v17 }
0x1424   : > { %3370 = vrcp.f32 %v2064_v60 }
0x142e   : > { %v3371_v63 = vpop.eup %3370 }
0x142f   : > { %v2068_v61 = vmul.f32 %v3371_v63, %v2004_v58 }
0x1492   : > { %v2071_v1 = vpop.permute.xlu0 %2070 }
0x1493   : > { %v2073_v38 = vmul.f32 %v3371_v63, %v2071_v1 }
0x1495   : > { %2075 = vrot.lane.b32.xlu1 %v2073_v38, %s3589_s20 }
0x1507   : > { %v2076_v18 = vpop.permute.xlu1 %2075 }
0x1508   : > { %v2078_v19 = vadd.f32 %v2076_v18, %v2068_v61 }
0x150a   : > { %3372 = vtanh.f32 %v2078_v19 }
0x1514   : > { %v3373_v21 = vpop.eup %3372 }
0x1515   : > { %2081 = vrot.lane.b32.xlu0 %v3373_v21, %s3588_s14 }
0x1587   : > { %v2082_v22 = vpop.permute.xlu0 %2081 }
0x1588   : > { %v2084_v23 = vmul.f32 %v3371_v63, %v2082_v22 }
0x158a   : > { %v2087_v24 = vpack.c.bf16 %v2084_v23, %v2084_v23 }
0x158c   : > { %2089 = vrot.lane.b32.xlu1 %v2087_v24, %s3589_s20 }
0x15fe   : > { %v2090_v25 = vpop.permute.xlu1 %2089 }
0x15ff   : > { %3161 = vmatmul.mubr.msk.bf16.vlgmr.msra.gmra.mrb[28].mxu1 %vm1573_vm8, %v2090_v25 }
0x1600   : > { %3173 = vmatpush3.bf16.msra.mxu1 %v4187_v54  ;;  %3176 = vmatprep.mubr.msk.bf16.mxu1 %vm3583_vm15, %v3582_v49 }
0x1601   : > { %3174 = vmatprep.subr.bf16.mxu1 %v3582_v49 }
0x1604   : > { %3175 = vmatpush3.bf16.msra.mxu1 %v4196_v41 }
0x1605   : > { %3188 = vmatprep.subr.bf16.mxu1 %v3582_v49 }
0x16d2   : > { %v2128_v28 = vpop.f32.mrb[28].mxu1 }
0x16d3   : > { %v2134_v29 = vadd.f32 %v2128_v28, %v2086_v27  ;;  %v3162_v30 = vpop.f32.mrb[29].mxu1 }
0x16d4   : > { %v2131_v31 = vpop.f32.mrb[30].mxu1 }
0x16d5   : > { %3374 = vtanh.f32 %v2134_v29  ;;  %v3163_v52 = vpop.f32.mrb[31].mxu1  ;;  %v2957_v32 = vmul.f32 -1.442695, %v2134_v29  ;;  %v2308_v29 = vld [vmem:[#allocation2 + $0xa] sm:$0x1] }
0x16d7   : > { %3376 = vpow2.f32 %v2957_v32 }
0x16df   : > { %v3375_v8 = vpop.eup %3374 }
0x16e0   : > { %2144 = vrot.lane.b32.xlu0 %v3375_v8, %s3588_s14 }
0x16e1   : > { %v3377_v33 = vpop.eup %3376 }
0x16e2   : > { %v2138_v26 = vadd.f32 1.0, %v3377_v33 }
0x16e4   : > { %3378 = vrcp.f32 %v2138_v26 }
0x16ee   : > { %v3379_v53 = vpop.eup %3378 }
0x16ef   : > { %v2142_v36 = vmul.f32 %v3379_v53, %v2078_v19 }
0x1752   : > { %v2145_v34 = vpop.permute.xlu0 %2144 }
0x1753   : > { %v2147_v35 = vmul.f32 %v3379_v53, %v2145_v34 }
0x1755   : > { %2149 = vrot.lane.b32.xlu1 %v2147_v35, %s3589_s20 }
0x17c7   : > { %v2150_v37 = vpop.permute.xlu1 %2149 }
0x17c8   : > { %v2152_v40 = vadd.f32 %v2150_v37, %v2142_v36 }
0x17ca   : > { %3380 = vtanh.f32 %v2152_v40 }
0x17d4   : > { %v3381_v62 = vpop.eup %3380 }
0x17d5   : > { %2155 = vrot.lane.b32.xlu0 %v3381_v62, %s3588_s14 }
0x1847   : > { %v2156_v3 = vpop.permute.xlu0 %2155 }
0x1848   : > { %v2158_v5 = vmul.f32 %v3379_v53, %v2156_v3 }
0x184a   : > { %v2161_v42 = vpack.c.bf16 %v2158_v5, %v2158_v5 }
0x184c   : > { %2163 = vrot.lane.b32.xlu1 %v2161_v42, %s3589_s20 }
0x18be   : > { %v2164_v43 = vpop.permute.xlu1 %2163 }
0x18bf   : > { %3169 = vmatmul.mubr.msk.bf16.vlgmr.msra.gmra.mrb[36].mxu0 %vm1573_vm8, %v2164_v43 }
0x18c0   : > { %3181 = vmatpush3.bf16.msra.mxu0 %v4187_v54  ;;  %3184 = vmatprep.mubr.msk.bf16.mxu0 %vm3583_vm15, %v3582_v49 }
0x18c1   : > { %3182 = vmatprep.subr.bf16.mxu0 %v3582_v49 }
0x18c4   : > { %3183 = vmatpush3.bf16.msra.mxu0 %v4196_v41 }
0x18c5   : > { %3196 = vmatprep.subr.bf16.mxu0 %v3582_v49 }
0x1992   : > { %v2202_v45 = vpop.f32.mrb[36].mxu0 }
0x1993   : > { %v2208_v46 = vadd.f32 %v2202_v45, %v2160_v44  ;;  %v3170_v47 = vpop.f32.mrb[37].mxu0 }
0x1994   : > { %v2205_v48 = vpop.f32.mrb[38].mxu0 }
0x1995   : > { %3382 = vtanh.f32 %v2208_v46  ;;  %v3171_v20 = vpop.f32.mrb[39].mxu0  ;;  %v2959_v0 = vmul.f32 -1.442695, %v2208_v46  ;;  %v2382_v46 = vld [vmem:[#allocation2 + $0xb] sm:$0x1] }
0x1997   : > { %3384 = vpow2.f32 %v2959_v0 }
0x199f   : > { %v3383_v50 = vpop.eup %3382 }
0x19a0   : > { %2218 = vrot.lane.b32.xlu0 %v3383_v50, %s3588_s14 }
0x19a1   : > { %v3385_v51 = vpop.eup %3384 }
0x19a2   : > { %v2212_v55 = vadd.f32 1.0, %v3385_v51 }
0x19a4   : > { %3386 = vrcp.f32 %v2212_v55 }
0x19ae   : > { %v3387_v39 = vpop.eup %3386 }
0x19af   : > { %v2216_v58 = vmul.f32 %v3387_v39, %v2152_v40 }
0x1a12   : > { %v2219_v56 = vpop.permute.xlu0 %2218 }
0x1a13   : > { %v2221_v57 = vmul.f32 %v3387_v39, %v2219_v56 }
0x1a15   : > { %2223 = vrot.lane.b32.xlu1 %v2221_v57, %s3589_s20 }
0x1a87   : > { %v2224_v59 = vpop.permute.xlu1 %2223 }
0x1a88   : > { %v2226_v2 = vadd.f32 %v2224_v59, %v2216_v58 }
0x1a8a   : > { %3388 = vtanh.f32 %v2226_v2 }
0x1a94   : > { %v3389_v4 = vpop.eup %3388 }
0x1a95   : > { %2229 = vrot.lane.b32.xlu0 %v3389_v4, %s3588_s14 }
0x1b07   : > { %v2230_v6 = vpop.permute.xlu0 %2229 }
0x1b08   : > { %v2232_v7 = vmul.f32 %v3387_v39, %v2230_v6 }
0x1b0a   : > { %v2235_v9 = vpack.c.bf16 %v2232_v7, %v2232_v7 }
0x1b0c   : > { %2237 = vrot.lane.b32.xlu1 %v2235_v9, %s3589_s20 }
0x1b7e   : > { %v2238_v10 = vpop.permute.xlu1 %2237 }
0x1b7f   : > { %3177 = vmatmul.mubr.msk.bf16.vlgmr.msra.gmra.mrb[32].mxu1 %vm1573_vm8, %v2238_v10 }
0x1b80   : > { %3189 = vmatpush3.bf16.msra.mxu1 %v4187_v54  ;;  %3192 = vmatprep.mubr.msk.bf16.mxu1 %vm3583_vm15, %v3582_v49 }
0x1b81   : > { %3190 = vmatprep.subr.bf16.mxu1 %v3582_v49 }
0x1b84   : > { %3191 = vmatpush3.bf16.msra.mxu1 %v4196_v41 }
0x1b85   : > { %3204 = vmatprep.subr.bf16.mxu1 %v3582_v49 }
0x1c52   : > { %v2276_v12 = vpop.f32.mrb[32].mxu1 }
0x1c53   : > { %v2282_v13 = vadd.f32 %v2276_v12, %v2234_v11  ;;  %v3178_v14 = vpop.f32.mrb[33].mxu1 }
0x1c54   : > { %v2279_v15 = vpop.f32.mrb[34].mxu1 }
0x1c55   : > { %3390 = vtanh.f32 %v2282_v13  ;;  %v3179_v16 = vpop.f32.mrb[35].mxu1  ;;  %v2961_v60 = vmul.f32 -1.442695, %v2282_v13  ;;  %v2456_v13 = vld [vmem:[#allocation2 + $0xc] sm:$0x1] }
0x1c57   : > { %3392 = vpow2.f32 %v2961_v60 }
0x1c5f   : > { %v3391_v17 = vpop.eup %3390 }
0x1c60   : > { %2292 = vrot.lane.b32.xlu0 %v3391_v17, %s3588_s14 }
0x1c61   : > { %v3393_v63 = vpop.eup %3392 }
0x1c62   : > { %v2286_v1 = vadd.f32 1.0, %v3393_v63 }
0x1c64   : > { %3394 = vrcp.f32 %v2286_v1 }
0x1c6e   : > { %v3395_v38 = vpop.eup %3394 }
0x1c6f   : > { %v2290_v19 = vmul.f32 %v3395_v38, %v2226_v2 }
0x1cd2   : > { %v2293_v61 = vpop.permute.xlu0 %2292 }
0x1cd3   : > { %v2295_v18 = vmul.f32 %v3395_v38, %v2293_v61 }
0x1cd5   : > { %2297 = vrot.lane.b32.xlu1 %v2295_v18, %s3589_s20 }
0x1d47   : > { %v2298_v21 = vpop.permute.xlu1 %2297 }
0x1d48   : > { %v2300_v22 = vadd.f32 %v2298_v21, %v2290_v19 }
0x1d4a   : > { %3396 = vtanh.f32 %v2300_v22 }
0x1d54   : > { %v3397_v23 = vpop.eup %3396 }
0x1d55   : > { %2303 = vrot.lane.b32.xlu0 %v3397_v23, %s3588_s14 }
0x1dc7   : > { %v2304_v24 = vpop.permute.xlu0 %2303 }
0x1dc8   : > { %v2306_v25 = vmul.f32 %v3395_v38, %v2304_v24 }
0x1dca   : > { %v2309_v27 = vpack.c.bf16 %v2306_v25, %v2306_v25 }
0x1dcc   : > { %2311 = vrot.lane.b32.xlu1 %v2309_v27, %s3589_s20 }
0x1e3e   : > { %v2312_v28 = vpop.permute.xlu1 %2311 }
0x1e3f   : > { %3185 = vmatmul.mubr.msk.bf16.vlgmr.msra.gmra.mrb[40].mxu0 %vm1573_vm8, %v2312_v28 }
0x1e40   : > { %3197 = vmatpush3.bf16.msra.mxu0 %v4187_v54  ;;  %3200 = vmatprep.mubr.msk.bf16.mxu0 %vm3583_vm15, %v3582_v49 }
0x1e41   : > { %3198 = vmatprep.subr.bf16.mxu0 %v3582_v49 }
0x1e44   : > { %3199 = vmatpush3.bf16.msra.mxu0 %v4196_v41 }
0x1e45   : > { %3212 = vmatprep.subr.bf16.mxu0 %v3582_v49 }
0x1f12   : > { %v2350_v30 = vpop.f32.mrb[40].mxu0 }
0x1f13   : > { %v2356_v31 = vadd.f32 %v2350_v30, %v2308_v29  ;;  %v3186_v52 = vpop.f32.mrb[41].mxu0 }
0x1f14   : > { %v2353_v8 = vpop.f32.mrb[42].mxu0 }
0x1f15   : > { %3398 = vtanh.f32 %v2356_v31  ;;  %v3187_v32 = vpop.f32.mrb[43].mxu0  ;;  %v2963_v26 = vmul.f32 -1.442695, %v2356_v31  ;;  %v2530_v31 = vld [vmem:[#allocation2 + $0xd] sm:$0x1] }
0x1f17   : > { %3400 = vpow2.f32 %v2963_v26 }
0x1f1f   : > { %v3399_v33 = vpop.eup %3398 }
0x1f20   : > { %2366 = vrot.lane.b32.xlu0 %v3399_v33, %s3588_s14 }
0x1f21   : > { %v3401_v53 = vpop.eup %3400 }
0x1f22   : > { %v2360_v34 = vadd.f32 1.0, %v3401_v53 }
0x1f24   : > { %3402 = vrcp.f32 %v2360_v34 }
0x1f2e   : > { %v3403_v35 = vpop.eup %3402 }
0x1f2f   : > { %v2364_v40 = vmul.f32 %v3403_v35, %v2300_v22 }
0x1f92   : > { %v2367_v36 = vpop.permute.xlu0 %2366 }
0x1f93   : > { %v2369_v37 = vmul.f32 %v3403_v35, %v2367_v36 }
0x1f95   : > { %2371 = vrot.lane.b32.xlu1 %v2369_v37, %s3589_s20 }
0x2007   : > { %v2372_v62 = vpop.permute.xlu1 %2371 }
0x2008   : > { %v2374_v3 = vadd.f32 %v2372_v62, %v2364_v40 }
0x200a   : > { %3404 = vtanh.f32 %v2374_v3 }
0x2014   : > { %v3405_v5 = vpop.eup %3404 }
0x2015   : > { %2377 = vrot.lane.b32.xlu0 %v3405_v5, %s3588_s14 }
0x2087   : > { %v2378_v42 = vpop.permute.xlu0 %2377 }
0x2088   : > { %v2380_v43 = vmul.f32 %v3403_v35, %v2378_v42 }
0x208a   : > { %v2383_v44 = vpack.c.bf16 %v2380_v43, %v2380_v43 }
0x208c   : > { %2385 = vrot.lane.b32.xlu1 %v2383_v44, %s3589_s20 }
0x20fe   : > { %v2386_v45 = vpop.permute.xlu1 %2385 }
0x20ff   : > { %3193 = vmatmul.mubr.msk.bf16.vlgmr.msra.gmra.mrb[36].mxu1 %vm1573_vm8, %v2386_v45 }
0x2100   : > { %3205 = vmatpush3.bf16.msra.mxu1 %v4187_v54  ;;  %3208 = vmatprep.mubr.msk.bf16.mxu1 %vm3583_vm15, %v3582_v49 }
0x2101   : > { %3206 = vmatprep.subr.bf16.mxu1 %v3582_v49 }
0x2104   : > { %3207 = vmatpush3.bf16.msra.mxu1 %v4196_v41 }
0x2105   : > { %3220 = vmatprep.subr.bf16.mxu1 %v3582_v49 }
0x21d2   : > { %v2424_v47 = vpop.f32.mrb[36].mxu1 }
0x21d3   : > { %v2430_v48 = vadd.f32 %v2424_v47, %v2382_v46  ;;  %v3194_v20 = vpop.f32.mrb[37].mxu1  ;;  %v2604_v46 = vld [vmem:[#allocation2 + $0xe] sm:$0x1] }
0x21d4   : > { %v2427_v50 = vpop.f32.mrb[38].mxu1 }
0x21d5   : > { %3406 = vtanh.f32 %v2430_v48  ;;  %v3195_v0 = vpop.f32.mrb[39].mxu1  ;;  %v2965_v55 = vmul.f32 -1.442695, %v2430_v48 }
0x21d7   : > { %3408 = vpow2.f32 %v2965_v55 }
0x21df   : > { %v3407_v51 = vpop.eup %3406 }
0x21e0   : > { %2440 = vrot.lane.b32.xlu0 %v3407_v51, %s3588_s14 }
0x21e1   : > { %v3409_v39 = vpop.eup %3408 }
0x21e2   : > { %v2434_v56 = vadd.f32 1.0, %v3409_v39 }
0x21e4   : > { %3410 = vrcp.f32 %v2434_v56 }
0x21ee   : > { %v3411_v57 = vpop.eup %3410 }
0x21ef   : > { %v2438_v2 = vmul.f32 %v3411_v57, %v2374_v3 }
0x2252   : > { %v2441_v58 = vpop.permute.xlu0 %2440 }
0x2253   : > { %v2443_v59 = vmul.f32 %v3411_v57, %v2441_v58 }
0x2255   : > { %2445 = vrot.lane.b32.xlu1 %v2443_v59, %s3589_s20 }
0x22c7   : > { %v2446_v4 = vpop.permute.xlu1 %2445 }
0x22c8   : > { %v2448_v6 = vadd.f32 %v2446_v4, %v2438_v2 }
0x22ca   : > { %3412 = vtanh.f32 %v2448_v6 }
0x22d4   : > { %v3413_v7 = vpop.eup %3412 }
0x22d5   : > { %2451 = vrot.lane.b32.xlu0 %v3413_v7, %s3588_s14 }
0x2347   : > { %v2452_v9 = vpop.permute.xlu0 %2451 }
0x2348   : > { %v2454_v10 = vmul.f32 %v3411_v57, %v2452_v9 }
0x234a   : > { %v2457_v11 = vpack.c.bf16 %v2454_v10, %v2454_v10 }
0x234c   : > { %2459 = vrot.lane.b32.xlu1 %v2457_v11, %s3589_s20 }
0x23be   : > { %v2460_v12 = vpop.permute.xlu1 %2459 }
0x23bf   : > { %3201 = vmatmul.mubr.msk.bf16.vlgmr.msra.gmra.mrb[44].mxu0 %vm1573_vm8, %v2460_v12 }
0x23c0   : > { %3213 = vmatpush3.bf16.msra.mxu0 %v4187_v54  ;;  %3216 = vmatprep.mubr.msk.bf16.mxu0 %vm3583_vm15, %v3582_v49 }
0x23c1   : > { %3214 = vmatprep.subr.bf16.mxu0 %v3582_v49 }
0x23c4   : > { %3215 = vmatpush3.bf16.msra.mxu0 %v4196_v41 }
0x23c5   : > { %3228 = vmatprep.subr.bf16.mxu0 %v3582_v49 }
0x2492   : > { %v2498_v14 = vpop.f32.mrb[44].mxu0 }
0x2493   : > { %v2504_v15 = vadd.f32 %v2498_v14, %v2456_v13  ;;  %v3202_v16 = vpop.f32.mrb[45].mxu0  ;;  %v2678_v13 = vld [vmem:[#allocation2 + $0xf] sm:$0x1] }
0x2494   : > { %v2501_v17 = vpop.f32.mrb[46].mxu0 }
0x2495   : > { %3414 = vtanh.f32 %v2504_v15  ;;  %v3203_v60 = vpop.f32.mrb[47].mxu0  ;;  %v2967_v1 = vmul.f32 -1.442695, %v2504_v15 }
0x2497   : > { %3416 = vpow2.f32 %v2967_v1 }
0x249f   : > { %v3415_v63 = vpop.eup %3414 }
0x24a0   : > { %2514 = vrot.lane.b32.xlu0 %v3415_v63, %s3588_s14 }
0x24a1   : > { %v3417_v38 = vpop.eup %3416 }
0x24a2   : > { %v2508_v61 = vadd.f32 1.0, %v3417_v38 }
0x24a4   : > { %3418 = vrcp.f32 %v2508_v61 }
0x24ae   : > { %v3419_v18 = vpop.eup %3418 }
0x24af   : > { %v2512_v22 = vmul.f32 %v3419_v18, %v2448_v6 }
0x2512   : > { %v2515_v19 = vpop.permute.xlu0 %2514 }
0x2513   : > { %v2517_v21 = vmul.f32 %v3419_v18, %v2515_v19 }
0x2515   : > { %2519 = vrot.lane.b32.xlu1 %v2517_v21, %s3589_s20 }
0x2587   : > { %v2520_v23 = vpop.permute.xlu1 %2519 }
0x2588   : > { %v2522_v24 = vadd.f32 %v2520_v23, %v2512_v22 }
0x258a   : > { %3420 = vtanh.f32 %v2522_v24 }
0x2594   : > { %v3421_v25 = vpop.eup %3420 }
0x2595   : > { %2525 = vrot.lane.b32.xlu0 %v3421_v25, %s3588_s14  ;;  %v3316_v25 = vld [vmem:[%s4367_s6] sm:$0xff]  }
0x2607   : > { %v2526_v27 = vpop.permute.xlu0 %2525 }
0x2608   : > { %v2528_v28 = vmul.f32 %v3419_v18, %v2526_v27  ;;  %v3317_v27 = vld [vmem:[%s4367_s6 + $0x8] sm:$0xff]  }
0x260a   : > { %v2531_v29 = vpack.c.bf16 %v2528_v28, %v2528_v28 }
0x260c   : > { %2533 = vrot.lane.b32.xlu1 %v2531_v29, %s3589_s20 }
0x267e   : > { %v2534_v30 = vpop.permute.xlu1 %2533 }
0x267f   : > { %3209 = vmatmul.mubr.msk.bf16.vlgmr.msra.gmra.mrb[40].mxu1 %vm1573_vm8, %v2534_v30 }
0x2680   : > { %3221 = vmatpush3.bf16.msra.mxu1 %v4187_v54  ;;  %3224 = vmatprep.mubr.msk.bf16.mxu1 %vm3583_vm15, %v3582_v49 }
0x2681   : > { %3222 = vmatprep.subr.bf16.mxu1 %v3582_v49 }
0x2684   : > { %3223 = vmatpush3.bf16.msra.mxu1 %v4196_v41 }
0x2752   : > { %v2572_v52 = vpop.f32.mrb[40].mxu1 }
0x2753   : > { %v2578_v8 = vadd.f32 %v2572_v52, %v2530_v31  ;;  %v3210_v32 = vpop.f32.mrb[41].mxu1 }
0x2754   : > { %v2575_v33 = vpop.f32.mrb[42].mxu1 }
0x2755   : > { %3422 = vtanh.f32 %v2578_v8  ;;  %v3211_v26 = vpop.f32.mrb[43].mxu1  ;;  %v2969_v34 = vmul.f32 -1.442695, %v2578_v8  ;;  %v2756_v8 = vld [vmem:[%s4368_s7] sm:$0x1] }
0x2757   : > { %3424 = vpow2.f32 %v2969_v34 }
0x275f   : > { %v3423_v53 = vpop.eup %3422 }
0x2760   : > { %2588 = vrot.lane.b32.xlu0 %v3423_v53, %s3588_s14 }
0x2761   : > { %v3425_v54 = vpop.eup %3424 }
0x2762   : > { %v2582_v35 = vadd.f32 1.0, %v3425_v54 }
0x2764   : > { %3426 = vrcp.f32 %v2582_v35 }
0x276e   : > { %v3427_v36 = vpop.eup %3426 }
0x276f   : > { %v2586_v41 = vmul.f32 %v3427_v36, %v2522_v24 }
0x27d2   : > { %v2589_v37 = vpop.permute.xlu0 %2588 }
0x27d3   : > { %v2591_v40 = vmul.f32 %v3427_v36, %v2589_v37 }
0x27d5   : > { %2593 = vrot.lane.b32.xlu1 %v2591_v40, %s3589_s20 }
0x2847   : > { %v2594_v62 = vpop.permute.xlu1 %2593 }
0x2848   : > { %v2596_v3 = vadd.f32 %v2594_v62, %v2586_v41 }
0x284a   : > { %3428 = vtanh.f32 %v2596_v3 }
0x2854   : > { %v3429_v5 = vpop.eup %3428 }
0x2855   : > { %2599 = vrot.lane.b32.xlu0 %v3429_v5, %s3588_s14 }
0x28c7   : > { %v2600_v42 = vpop.permute.xlu0 %2599 }
0x28c8   : > { %v2602_v43 = vmul.f32 %v3427_v36, %v2600_v42 }
0x28ca   : > { %v2605_v44 = vpack.c.bf16 %v2602_v43, %v2602_v43 }
0x28cc   : > { %2607 = vrot.lane.b32.xlu1 %v2605_v44, %s3589_s20 }
0x293e   : > { %v2608_v45 = vpop.permute.xlu1 %2607 }
0x293f   : > { %3217 = vmatmul.mubr.msk.bf16.vlgmr.msra.gmra.mrb[48].mxu0 %vm1573_vm8, %v2608_v45 }
0x2940   : > { %3232 = vmatprep.mubr.msk.bf16.mxu0 %vm3583_vm15, %v3582_v49  ;;  %3229 = vmatpush3.bf16.msra.mxu0 %v3316_v25 }
0x2941   : > { %3230 = vmatprep.subr.bf16.mxu0 %v3582_v49 }
0x2944   : > { %3231 = vmatpush3.bf16.msra.mxu0 %v3317_v27 }
0x2a12   : > { %v2646_v47 = vpop.f32.mrb[48].mxu0 }
0x2a13   : > { %v2652_v48 = vadd.f32 %v2646_v47, %v2604_v46  ;;  %v3218_v20 = vpop.f32.mrb[49].mxu0 }
0x2a14   : > { %v2649_v50 = vpop.f32.mrb[50].mxu0 }
0x2a15   : > { %3430 = vtanh.f32 %v2652_v48  ;;  %v3219_v0 = vpop.f32.mrb[51].mxu0  ;;  %v2971_v55 = vmul.f32 -1.442695, %v2652_v48 }
0x2a17   : > { %3432 = vpow2.f32 %v2971_v55 }
0x2a1f   : > { %v3431_v51 = vpop.eup %3430 }
0x2a20   : > { %2662 = vrot.lane.b32.xlu0 %v3431_v51, %s3588_s14 }
0x2a21   : > { %v3433_v39 = vpop.eup %3432 }
0x2a22   : > { %v2656_v56 = vadd.f32 1.0, %v3433_v39 }
0x2a24   : > { %3434 = vrcp.f32 %v2656_v56 }
0x2a2e   : > { %v3435_v57 = vpop.eup %3434 }
0x2a2f   : > { %v2660_v2 = vmul.f32 %v3435_v57, %v2596_v3 }
0x2a92   : > { %v2663_v58 = vpop.permute.xlu0 %2662 }
0x2a93   : > { %v2665_v59 = vmul.f32 %v3435_v57, %v2663_v58 }
0x2a95   : > { %2667 = vrot.lane.b32.xlu1 %v2665_v59, %s3589_s20 }
0x2b07   : > { %v2668_v4 = vpop.permute.xlu1 %2667 }
0x2b08   : > { %v2670_v6 = vadd.f32 %v2668_v4, %v2660_v2 }
0x2b0a   : > { %3436 = vtanh.f32 %v2670_v6 }
0x2b14   : > { %v3437_v7 = vpop.eup %3436 }
0x2b15   : > { %2673 = vrot.lane.b32.xlu0 %v3437_v7, %s3588_s14 }
0x2b87   : > { %v2674_v9 = vpop.permute.xlu0 %2673 }
0x2b88   : > { %v2676_v10 = vmul.f32 %v3435_v57, %v2674_v9 }
0x2b8a   : > { %v2679_v11 = vpack.c.bf16 %v2676_v10, %v2676_v10 }
0x2b8c   : > { %2681 = vrot.lane.b32.xlu1 %v2679_v11, %s3589_s20 }
0x2bfe   : > { %v2682_v12 = vpop.permute.xlu1 %2681 }
0x2bff   : > { %3225 = vmatmul.mubr.msk.bf16.vlgmr.msra.gmra.mrb[44].mxu1 %vm1573_vm8, %v2682_v12 }
0x2cd2   : > { %v2720_v14 = vpop.f32.mrb[44].mxu1 }
0x2cd3   : > { %v2726_v15 = vadd.f32 %v2720_v14, %v2678_v13  ;;  %v3226_v16 = vpop.f32.mrb[45].mxu1 }
0x2cd4   : > { %v2723_v17 = vpop.f32.mrb[46].mxu1 }
0x2cd5   : > { %3438 = vtanh.f32 %v2726_v15  ;;  %v3227_v60 = vpop.f32.mrb[47].mxu1  ;;  %v2973_v1 = vmul.f32 -1.442695, %v2726_v15 }
0x2cd7   : > { %3440 = vpow2.f32 %v2973_v1 }
0x2cdf   : > { %v3439_v63 = vpop.eup %3438 }
0x2ce0   : > { %2736 = vrot.lane.b32.xlu0 %v3439_v63, %s3588_s14 }
0x2ce1   : > { %v3441_v38 = vpop.eup %3440 }
0x2ce2   : > { %v2730_v61 = vadd.f32 1.0, %v3441_v38 }
0x2ce4   : > { %3442 = vrcp.f32 %v2730_v61 }
0x2cee   : > { %v3443_v18 = vpop.eup %3442 }
0x2cef   : > { %v2734_v22 = vmul.f32 %v3443_v18, %v2670_v6 }
0x2d52   : > { %v2737_v19 = vpop.permute.xlu0 %2736 }
0x2d53   : > { %v2739_v21 = vmul.f32 %v3443_v18, %v2737_v19 }
0x2d55   : > { %2741 = vrot.lane.b32.xlu1 %v2739_v21, %s3589_s20 }
0x2dc7   : > { %v2742_v23 = vpop.permute.xlu1 %2741 }
0x2dc8   : > { %v2744_v24 = vadd.f32 %v2742_v23, %v2734_v22 }
0x2dca   : > { %3444 = vtanh.f32 %v2744_v24 }
0x2dd4   : > { %v3445_v28 = vpop.eup %3444 }
0x2dd5   : > { %2747 = vrot.lane.b32.xlu0 %v3445_v28, %s3588_s14 }
0x2e47   : > { %v2748_v29 = vpop.permute.xlu0 %2747 }
0x2e48   : > { %v2750_v30 = vmul.f32 %v3443_v18, %v2748_v29 }
0x2e4a   : > { %v2751_v31 = vpack.c.bf16 %v2750_v30, %v2750_v30 }
0x2e4c   : > { %2758 = vrot.lane.b32.xlu1 %v2751_v31, %s3589_s20  ;;  %s4319_s20 = scalar_lea.hbm %s4369_s8, %s2977_s19 }
0x2ebe   : > { %v2759_v52 = vpop.permute.xlu1 %2758 }
0x2ebf   : > { %3233 = vmatmul.mubr.msk.bf16.vlgmr.msra.gmra.mrb[52].mxu0 %vm1573_vm8, %v2759_v52 }
0x2f92   : > { %v2809_v49 = vpop.f32.mrb[52].mxu0 }
0x2f93   : > { %v2810_v32 = vadd.f32 %v2809_v49, %v2756_v8  ;;  %v3234_v33 = vpop.f32.mrb[53].mxu0 }
0x2f94   : > { %v2812_v26 = vpop.f32.mrb[54].mxu0 }
0x2f95   : > { %v3235_v53 = vpop.f32.mrb[55].mxu0  ;;  %2816 = vst.msk [vmem:[%s327_s29] sm:$0x1] %vm2815_vm9, %v2810_v32 }
0x2f96   : > { %3517 = shalt.err (!%p3514_p11)
}
0x2f97   : > { %s3518_s26 = scalar_lea.hbm %s4319_s20, 16  ;;  %s3522_s13 = scalar_lea.hbm %s4369_s8, 32 }
0x2f98   : > { %p3519_p13 = scmp.ne.s32.totalorder %s4319_s20, %s3518_s26  ;;  %p3523_p6 = scmp.lt.u32.totalorder %s4319_s20, %s4369_s8 }
0x2f99   : > { %p3524_p9 = scmp.lt.u32.totalorder %s3522_s13, %s3518_s26  ;;  %p3526_p12 = scmp.lt.u32.totalorder %s3518_s26, %s4319_s20 }
0x2f9a   : > { %p3520_p5 = pnand %p3519_p13, %p4385_p1 }
0x2f9b   : > { %p3525_p10 = por %p3524_p9, %p3523_p6 }
0x2f9c   : > { %p3521_p0 = pneg %p3520_p5 }
0x2f9d   : > { %p3527_p2 = por %p3526_p12, %p3525_p10 }
0x2f9f   : > { %p3528_p3 = pnand %p3527_p2, %p3521_p0 }
0x2fa1   : > { %3531 = shalt.err (!%p3528_p3)
}
0x2fa2   : > { %3244 = dma.vmem_to_hbm [thread:$0]  (%p4385_p1), %s4321_s22, 16, %s4319_s20, %s2818_s9  }
0x2fa3 PF: > { %p3261_p4 = scmp.ge.s32.totalorder %s3574_s30, 2  ;;  %s2842_s29 = sand.u32 1, %s3562_s27  }
0x2fa4   : > { %p4386_p7 = scmp.ne.s32.totalorder %s4377_s16, 0  ;;  %s2843_s14 = scalar_lea.sflag [#allocation5], %s2842_s29 }
0x2fa6   : > { %p3254_p8 = pnand %p3261_p4, %p4386_p7 }
0x2fa8   : > { %3557 = dma.done.wait (!%p3254_p8), %s2843_s14, 16  }
0x2fa9   : > { %3559 = vsyncadd (!%p3254_p8), %s2843_s14, 4294967280  ;;  %s4387_s21 = sld [smem:[#allocation12_spill]]  ;;  %s4388_s29 = sld [smem:[#allocation13_spill]] }
0x2faa   : > { %p20_p11 = scmp.ge.s32.totalorder %s3661_s11, 4   ;;  %s4389_s27 = smov %s3566_s28 }
0x2fab   : > { %s4391_s30 = smov %s3661_s11 }
0x2fac   :  { %22 = sbr.rel (!%p20_p11) target bundleno = 5 (0x5), region = 111 }
0x2faf   : > { %s4390_s28 = smov %s4387_s21 }
0x2fb3   :  { %2847 = vsyncpa [#allocation4], 1 }
0x2fb4   :  { %2849 = vsyncpa [#allocation4 + $0x1], 1 }
0x2fb5   :  { %2850 = vsyncpa [#allocation7], 1 }
0x2fb6   :  { %2851 = vsyncpa [#allocation5], 1 }
0x2fb7   :  { %2853 = vsyncpa [#allocation5 + $0x1], 1 }

</bundles_post_ra>
